<compile_context>
chip_gen: v6e
topology: v6e:2x2x1
jax: 0.10.0
libtpu: 0.0.40
codegen_flags: <defaults>
</compile_context>

<pallas_src>
import jax
import jax.numpy as jnp
from jax.experimental import pallas as pl
from jax.experimental.pallas import tpu as pltpu

# ---------------- sizes (small, consistent with the module) ----------------
T = 8          # sequence length
B = 8          # batch  (multiple captions/beams should be fused here for real throughput)
E = 32         # input_size (embedding dim)
H = 32         # hidden_size
F = 64         # feature_size
V = 128        # n_vocab


def generator_kernel(y_ref, ctx_ref, emb_ref, att_ref, dec0_ref, dec1_ref,
                     h2o_ref, o2p_ref, probs_ref, h2_sc):
    f32 = jnp.float32

    # ---- parameters: static, 8-row-aligned sublane slices of the packed refs ----
    att_w = att_ref[0:F, :]                    # (F, H)
    att_b = att_ref[F:F + 1, :]                # (1, H)   row 64

    w_ih0 = dec0_ref[0:E, :]                   # (E, 3H)  rows  0:32
    w_hh0 = dec0_ref[E:E + H, :]               # (H, 3H)  rows 32:64
    b_ih0 = dec0_ref[64:65, :]                 # (1, 3H)  row 64  (8-aligned)
    b_hh0 = dec0_ref[72:73, :]                 # (1, 3H)  row 72  (8-aligned)

    w_ih1 = dec1_ref[0:H, :]                   # (H, 3H)
    w_hh1 = dec1_ref[H:2 * H, :]               # (H, 3H)
    b_ih1 = dec1_ref[64:65, :]                 # (1, 3H)
    b_hh1 = dec1_ref[72:73, :]                 # (1, 3H)

    h2o_w = h2o_ref[0:H, :]                    # (H, E)
    h2o_b = h2o_ref[H:H + 1, :]                # (1, E)   row 32
    o2p_w = o2p_ref[0:E, :]                    # (E, V)
    o2p_b = o2p_ref[E:E + 1, :]                # (1, V)   row 32

    # ---- f_init: zero hidden state; attention context ct (constant over t) ----
    ct = jnp.tanh(jnp.dot(ctx_ref[...], att_w,
                          preferred_element_type=f32) + att_b)            # (B, H)

    # ---- fused embedding lookup (one-hot @ emb on MXU) + hoisted dec0
    #      input projection for all T in one matmul ----
    ids = y_ref[...]                                                      # (T*B, 1) int32
    onehot = (ids == jax.lax.broadcasted_iota(jnp.int32, (T * B, V), 1)
              ).astype(f32)                                               # (T*B, V)
    y_emb = jnp.dot(onehot, emb_ref[...], preferred_element_type=f32)     # (T*B, E)
    gi0_all = jnp.dot(y_emb, w_ih0, preferred_element_type=f32) + b_ih0   # (T*B, 3H)

    # ---- serial GRU recurrence over T, fully unrolled at trace time ----
    h = jnp.zeros((B, H), f32)                 # _rnn_init_zero; lives in vregs
    for t in range(T):
        # dec0: GRUCell(E -> H); only the hidden projection remains in the loop.
        gi0 = gi0_all[t * B:(t + 1) * B, :]                               # (B, 3H)
        gh0 = jnp.dot(h, w_hh0, preferred_element_type=f32) + b_hh0       # (B, 3H)
        rz0 = jax.nn.sigmoid(gi0[:, 0:2 * H] + gh0[:, 0:2 * H])           # one EUP push
        r0, z0 = rz0[:, 0:H], rz0[:, H:2 * H]
        n0 = jnp.tanh(gi0[:, 2 * H:3 * H] + r0 * gh0[:, 2 * H:3 * H])
        h1 = (1.0 - z0) * n0 + z0 * h

        # dec1: GRUCell(H -> H); two small matmuls (no lane-straddling fusion).
        gi1 = jnp.dot(h1 * ct, w_ih1, preferred_element_type=f32) + b_ih1  # (B, 3H)
        gh1 = jnp.dot(h1, w_hh1, preferred_element_type=f32) + b_hh1       # (B, 3H)
        rz1 = jax.nn.sigmoid(gi1[:, 0:2 * H] + gh1[:, 0:2 * H])            # one EUP push
        r1, z1 = rz1[:, 0:H], rz1[:, H:2 * H]
        n1 = jnp.tanh(gi1[:, 2 * H:3 * H] + r1 * gh1[:, 2 * H:3 * H])
        h2 = (1.0 - z1) * n1 + z1 * h1

        # bound live ranges across the unroll with a per-step VMEM store
        h2_sc[t * B:(t + 1) * B, :] = h2
        h = h2

    # ---- deferred, batched output head + softmax (lane-dense V=128) ----
    h2_all = h2_sc[...]                                                   # (T*B, H)
    logit = jnp.tanh(jnp.dot(h2_all, h2o_w,
                             preferred_element_type=f32) + h2o_b)          # (T*B, E)
    scores = jnp.dot(logit, o2p_w, preferred_element_type=f32) + o2p_b     # (T*B, V)
    scores = scores - jnp.max(scores, axis=-1, keepdims=True)
    e = jnp.exp(scores)
    # exact division kept so row sums stay within 1e-4 of 1.0
    prob = e / jnp.sum(e, axis=-1, keepdims=True)
    probs_ref[...] = prob.reshape(T, B, V).astype(probs_ref.dtype)


def pack_params(emb_table, params):
    """One-time parameter packing (hoisted out of the per-call forward).

    Every segment (weights and 1-row biases) starts on an 8-row sublane
    boundary so the kernel's static slices lower to plain vreg loads.
    """
    (att_w, att_b,
     w_ih0, w_hh0, b_ih0, b_hh0,
     w_ih1, w_hh1, b_ih1, b_hh1,
     h2o_w, h2o_b, o2p_w, o2p_b) = params

    def pad_rows(x, rows):
        return jnp.pad(x, ((0, rows - x.shape[0]), (0, 0)))

    def gru_pack(w_ih, w_hh, b_ih, b_hh):
        # rows [0:in] w_ih, [in:in+H] w_hh, [64] b_ih, [72] b_hh  -> (80, 3H)
        return jnp.concatenate(
            [pad_rows(jnp.concatenate([w_ih, w_hh], axis=0), 64),
             pad_rows(b_ih, 8),
             pad_rows(b_hh, 8)], axis=0)

    att_pack = pad_rows(jnp.concatenate([att_w, att_b], axis=0), 72)      # (72, H)
    dec0_pack = gru_pack(w_ih0, w_hh0, b_ih0, b_hh0)                      # (80, 3H)
    dec1_pack = gru_pack(w_ih1, w_hh1, b_ih1, b_hh1)                      # (80, 3H)
    h2o_pack = pad_rows(jnp.concatenate([h2o_w, h2o_b], axis=0), 40)      # (40, E)
    o2p_pack = pad_rows(jnp.concatenate([o2p_w, o2p_b], axis=0), 40)      # (40, V)
    return (emb_table, att_pack, dec0_pack, dec1_pack, h2o_pack, o2p_pack)


def generator_forward(y_tokens, ctx, packed):
    """y_tokens: (T, B) int32 token ids; ctx: (B, F) f32 (== features['feats'][0][0]);
    packed: output of pack_params (computed once at model init)."""
    emb_table, att_pack, dec0_pack, dec1_pack, h2o_pack, o2p_pack = packed
    y2d = y_tokens.reshape(T * B, 1).astype(jnp.int32)

    # No grid: the whole (tiny) problem is one kernel invocation; default
    # whole-array BlockSpecs place every operand/result in VMEM.
    return pl.pallas_call(
        generator_kernel,
        out_shape=jax.ShapeDtypeStruct((T, B, V), jnp.float32),
        scratch_shapes=[pltpu.VMEM((T * B, H), jnp.float32)],
    )(y2d, ctx, emb_table, att_pack, dec0_pack, dec1_pack, h2o_pack, o2p_pack)


def generator_reference(y_emb, ctx, params):
    """Pure-JAX reference mirroring the PyTorch forward (for validation)."""
    (att_w, att_b,
     w_ih0, w_hh0, b_ih0, b_hh0,
     w_ih1, w_hh1, b_ih1, b_hh1,
     h2o_w, h2o_b, o2p_w, o2p_b) = params

    def gru(x, h, w_ih, w_hh, b_ih, b_hh):
        gi = x @ w_ih + b_ih
        gh = h @ w_hh + b_hh
        r = jax.nn.sigmoid(gi[:, 0:H] + gh[:, 0:H])
        z = jax.nn.sigmoid(gi[:, H:2 * H] + gh[:, H:2 * H])
        n = jnp.tanh(gi[:, 2 * H:3 * H] + r * gh[:, 2 * H:3 * H])
        return (1.0 - z) * n + z * h

    ct = jnp.tanh(ctx @ att_w + att_b)
    h = jnp.zeros((B, H), jnp.float32)
    probs = []
    for t in range(T):
        h1 = gru(y_emb[t], h, w_ih0, w_hh0, b_ih0, b_hh0)
        h2 = gru(h1 * ct, h1, w_ih1, w_hh1, b_ih1, b_hh1)
        logit = jnp.tanh(h2 @ h2o_w + h2o_b)
        probs.append(jax.nn.softmax(logit @ o2p_w + o2p_b, axis=-1))
        h = h2
    return jnp.stack(probs, axis=0)


def make_params(key):
    """Deterministic synthetic parameters (shapes from Generator.__init__)."""
    ks = jax.random.split(key, 12)
    s = 0.1
    emb_table = s * jax.random.normal(ks[0], (V, E), jnp.float32)
    att_w = s * jax.random.normal(ks[1], (F, H), jnp.float32)
    att_b = s * jax.random.normal(ks[2], (1, H), jnp.float32)
    # GRUCell dec0 (input E -> hidden H); stored transposed as (in, 3H) for x @ W
    w_ih0 = s * jax.random.normal(ks[3], (E, 3 * H), jnp.float32)
    w_hh0 = s * jax.random.normal(ks[4], (H, 3 * H), jnp.float32)
    b_ih0 = s * jax.random.normal(ks[5], (1, 3 * H), jnp.float32)
    b_hh0 = s * jax.random.normal(ks[6], (1, 3 * H), jnp.float32)
    # GRUCell dec1 (hidden H -> hidden H)
    w_ih1 = s * jax.random.normal(ks[7], (H, 3 * H), jnp.float32)
    w_hh1 = s * jax.random.normal(ks[8], (H, 3 * H), jnp.float32)
    b_ih1 = s * jax.random.normal(ks[9], (1, 3 * H), jnp.float32)
    b_hh1 = s * jax.random.normal(ks[10], (1, 3 * H), jnp.float32)
    # hid2out: FF(H -> E), bias_zero=True
    h2o_w = s * jax.random.normal(ks[11], (H, E), jnp.float32)
    h2o_b = jnp.zeros((1, E), jnp.float32)
    # out2prob: FF(E -> V)
    o2p_w = s * jax.random.normal(jax.random.fold_in(key, 99), (E, V), jnp.float32)
    o2p_b = s * jax.random.normal(jax.random.fold_in(key, 100), (1, V), jnp.float32)
    params = (att_w, att_b,
              w_ih0, w_hh0, b_ih0, b_hh0,
              w_ih1, w_hh1, b_ih1, b_hh1,
              h2o_w, h2o_b, o2p_w, o2p_b)
    return emb_table, params


if __name__ == "__main__":
    key = jax.random.PRNGKey(0)
    k_y, k_ctx, k_p = jax.random.split(key, 3)

    # Inputs mirroring the PyTorch forward: y token ids (T, B),
    # features['feats'] = (ctx (1, B, F), ctx_mask (1, B)).
    y = jax.random.randint(k_y, (T, B), 0, V, dtype=jnp.int32)
    ctx = jax.random.normal(k_ctx, (1, B, F), jnp.float32)

    emb_table, params = make_params(k_p)

    # One-time packing at "model init" (hoisted out of the forward path).
    packed = pack_params(emb_table, params)
    ctx0 = ctx[0]                   # features['feats'][0] -> (B, F); FF + squeeze(0)

    # TODO(synk): dropout (global + 'local' per-sample variant) and the
    # torch.distributions random init are training-time stochastic ops; the
    # deterministic eval path (p=0 / 'zero' init) is what the kernel implements.
    probs = generator_forward(y, ctx0, packed)
    jax.block_until_ready(probs)

    assert probs.shape == (T, B, V)
    # rows of a softmax must sum to 1
    assert jnp.allclose(jnp.sum(probs, axis=-1), 1.0, atol=1e-4)
    # validate against the pure-JAX reference of the PyTorch forward
    ref = generator_reference(emb_table[y], ctx0, params)
    max_err = float(jnp.max(jnp.abs(probs - ref)))
    assert max_err < 2e-3, f"kernel/reference mismatch: max|diff|={max_err}"
    print("KERNEL_OK")
</pallas_src>

<mosaic_0001>
module attributes {stable_mosaic.version = 11 : i64} {
  func.func @generator_kernel(%arg0: memref<64x1xi32, #tpu.memory_space<vmem>>, %arg1: memref<8x64xf32, #tpu.memory_space<vmem>>, %arg2: memref<128x32xf32, #tpu.memory_space<vmem>>, %arg3: memref<72x32xf32, #tpu.memory_space<vmem>>, %arg4: memref<80x96xf32, #tpu.memory_space<vmem>>, %arg5: memref<80x96xf32, #tpu.memory_space<vmem>>, %arg6: memref<40x32xf32, #tpu.memory_space<vmem>>, %arg7: memref<40x128xf32, #tpu.memory_space<vmem>>, %arg8: memref<8x8x128xf32, #tpu.memory_space<vmem>>, %arg9: memref<64x32xf32, #tpu.memory_space<vmem>>) attributes {dimension_semantics = [], scalar_prefetch = 0 : i64, scratch_operands = 1 : i64, tpu.core_type = #tpu.core_type<tc>} {
    %c0 = arith.constant 0 : index
    %c0_0 = arith.constant 0 : index
    %0 = vector.load %arg3[%c0, %c0_0] : memref<72x32xf32, #tpu.memory_space<vmem>>, vector<64x32xf32>
    %c64 = arith.constant 64 : index
    %c0_1 = arith.constant 0 : index
    %1 = vector.load %arg3[%c64, %c0_1] : memref<72x32xf32, #tpu.memory_space<vmem>>, vector<1x32xf32>
    %c0_2 = arith.constant 0 : index
    %c0_3 = arith.constant 0 : index
    %2 = vector.load %arg4[%c0_2, %c0_3] : memref<80x96xf32, #tpu.memory_space<vmem>>, vector<32x96xf32>
    %c32 = arith.constant 32 : index
    %c0_4 = arith.constant 0 : index
    %3 = vector.load %arg4[%c32, %c0_4] : memref<80x96xf32, #tpu.memory_space<vmem>>, vector<32x96xf32>
    %c64_5 = arith.constant 64 : index
    %c0_6 = arith.constant 0 : index
    %4 = vector.load %arg4[%c64_5, %c0_6] : memref<80x96xf32, #tpu.memory_space<vmem>>, vector<1x96xf32>
    %c72 = arith.constant 72 : index
    %c0_7 = arith.constant 0 : index
    %5 = vector.load %arg4[%c72, %c0_7] : memref<80x96xf32, #tpu.memory_space<vmem>>, vector<1x96xf32>
    %c0_8 = arith.constant 0 : index
    %c0_9 = arith.constant 0 : index
    %6 = vector.load %arg5[%c0_8, %c0_9] : memref<80x96xf32, #tpu.memory_space<vmem>>, vector<32x96xf32>
    %c32_10 = arith.constant 32 : index
    %c0_11 = arith.constant 0 : index
    %7 = vector.load %arg5[%c32_10, %c0_11] : memref<80x96xf32, #tpu.memory_space<vmem>>, vector<32x96xf32>
    %c64_12 = arith.constant 64 : index
    %c0_13 = arith.constant 0 : index
    %8 = vector.load %arg5[%c64_12, %c0_13] : memref<80x96xf32, #tpu.memory_space<vmem>>, vector<1x96xf32>
    %c72_14 = arith.constant 72 : index
    %c0_15 = arith.constant 0 : index
    %9 = vector.load %arg5[%c72_14, %c0_15] : memref<80x96xf32, #tpu.memory_space<vmem>>, vector<1x96xf32>
    %c0_16 = arith.constant 0 : index
    %c0_17 = arith.constant 0 : index
    %10 = vector.load %arg6[%c0_16, %c0_17] : memref<40x32xf32, #tpu.memory_space<vmem>>, vector<32x32xf32>
    %c32_18 = arith.constant 32 : index
    %c0_19 = arith.constant 0 : index
    %11 = vector.load %arg6[%c32_18, %c0_19] : memref<40x32xf32, #tpu.memory_space<vmem>>, vector<1x32xf32>
    %c0_20 = arith.constant 0 : index
    %c0_21 = arith.constant 0 : index
    %12 = vector.load %arg7[%c0_20, %c0_21] : memref<40x128xf32, #tpu.memory_space<vmem>>, vector<32x128xf32>
    %c32_22 = arith.constant 32 : index
    %c0_23 = arith.constant 0 : index
    %13 = vector.load %arg7[%c32_22, %c0_23] : memref<40x128xf32, #tpu.memory_space<vmem>>, vector<1x128xf32>
    %c0_24 = arith.constant 0 : index
    %c0_25 = arith.constant 0 : index
    %14 = vector.load %arg1[%c0_24, %c0_25] : memref<8x64xf32, #tpu.memory_space<vmem>>, vector<8x64xf32>
    %cst = arith.constant dense<0.000000e+00> : vector<8x32xf32>
    %15 = tpu.matmul %14, %0, %cst {dimension_numbers = #tpu.dot_dimension_numbers<[1], [0], [0], [1], [0, 0, 1, 1], [], []>} : vector<8x64xf32>, vector<64x32xf32>, vector<8x32xf32> -> vector<8x32xf32>
    %16 = vector.broadcast %1 : vector<1x32xf32> to vector<8x32xf32>
    %17 = arith.addf %15, %16 : vector<8x32xf32>
    %18 = math.tanh %17 : vector<8x32xf32>
    %c0_26 = arith.constant 0 : index
    %c0_27 = arith.constant 0 : index
    %19 = vector.load %arg0[%c0_26, %c0_27] : memref<64x1xi32, #tpu.memory_space<vmem>>, vector<64x1xi32>
    %20 = tpu.iota {dimensions = array<i32: 1>} : vector<64x128xi32>
    %21 = vector.broadcast %19 : vector<64x1xi32> to vector<64x128xi32>
    %22 = arith.cmpi eq, %21, %20 : vector<64x128xi32>
    %23 = arith.extui %22 : vector<64x128xi1> to vector<64x128xi32>
    %24 = arith.sitofp %23 : vector<64x128xi32> to vector<64x128xf32>
    %c0_28 = arith.constant 0 : index
    %c0_29 = arith.constant 0 : index
    %25 = vector.load %arg2[%c0_28, %c0_29] : memref<128x32xf32, #tpu.memory_space<vmem>>, vector<128x32xf32>
    %cst_30 = arith.constant dense<0.000000e+00> : vector<64x32xf32>
    %26 = tpu.matmul %24, %25, %cst_30 {dimension_numbers = #tpu.dot_dimension_numbers<[1], [0], [0], [1], [0, 0, 1, 1], [], []>} : vector<64x128xf32>, vector<128x32xf32>, vector<64x32xf32> -> vector<64x32xf32>
    %cst_31 = arith.constant dense<0.000000e+00> : vector<64x96xf32>
    %27 = tpu.matmul %26, %2, %cst_31 {dimension_numbers = #tpu.dot_dimension_numbers<[1], [0], [0], [1], [0, 0, 1, 1], [], []>} : vector<64x32xf32>, vector<32x96xf32>, vector<64x96xf32> -> vector<64x96xf32>
    %28 = vector.broadcast %4 : vector<1x96xf32> to vector<64x96xf32>
    %29 = arith.addf %27, %28 : vector<64x96xf32>
    %cst_32 = arith.constant 0.000000e+00 : f32
    %30 = vector.broadcast %cst_32 : f32 to vector<8x32xf32>
    %31 = vector.extract_strided_slice %29 {offsets = [0, 0], sizes = [8, 96], strides = [1, 1]} : vector<64x96xf32> to vector<8x96xf32>
    %cst_33 = arith.constant dense<0.000000e+00> : vector<8x96xf32>
    %32 = tpu.matmul %30, %3, %cst_33 {dimension_numbers = #tpu.dot_dimension_numbers<[1], [0], [0], [1], [0, 0, 1, 1], [], []>} : vector<8x32xf32>, vector<32x96xf32>, vector<8x96xf32> -> vector<8x96xf32>
    %33 = vector.broadcast %5 : vector<1x96xf32> to vector<8x96xf32>
    %34 = arith.addf %32, %33 : vector<8x96xf32>
    %35 = vector.extract_strided_slice %31 {offsets = [0, 0], sizes = [8, 64], strides = [1, 1]} : vector<8x96xf32> to vector<8x64xf32>
    %36 = vector.extract_strided_slice %34 {offsets = [0, 0], sizes = [8, 64], strides = [1, 1]} : vector<8x96xf32> to vector<8x64xf32>
    %37 = arith.addf %35, %36 : vector<8x64xf32>
    %38 = arith.negf %37 : vector<8x64xf32>
    %39 = math.exp %38 : vector<8x64xf32>
    %cst_34 = arith.constant 1.000000e+00 : f32
    %40 = vector.broadcast %cst_34 : f32 to vector<8x64xf32>
    %41 = arith.addf %40, %39 : vector<8x64xf32>
    %42 = arith.divf %40, %41 : vector<8x64xf32>
    %43 = vector.extract_strided_slice %42 {offsets = [0, 0], sizes = [8, 32], strides = [1, 1]} : vector<8x64xf32> to vector<8x32xf32>
    %44 = vector.extract_strided_slice %42 {offsets = [0, 32], sizes = [8, 32], strides = [1, 1]} : vector<8x64xf32> to vector<8x32xf32>
    %45 = vector.extract_strided_slice %31 {offsets = [0, 64], sizes = [8, 32], strides = [1, 1]} : vector<8x96xf32> to vector<8x32xf32>
    %46 = vector.extract_strided_slice %34 {offsets = [0, 64], sizes = [8, 32], strides = [1, 1]} : vector<8x96xf32> to vector<8x32xf32>
    %47 = arith.mulf %43, %46 : vector<8x32xf32>
    %48 = arith.addf %45, %47 : vector<8x32xf32>
    %49 = math.tanh %48 : vector<8x32xf32>
    %cst_35 = arith.constant 1.000000e+00 : f32
    %50 = vector.broadcast %cst_35 : f32 to vector<8x32xf32>
    %51 = arith.subf %50, %44 : vector<8x32xf32>
    %52 = arith.mulf %51, %49 : vector<8x32xf32>
    %53 = arith.mulf %44, %30 : vector<8x32xf32>
    %54 = arith.addf %52, %53 : vector<8x32xf32>
    %55 = arith.mulf %54, %18 : vector<8x32xf32>
    %cst_36 = arith.constant dense<0.000000e+00> : vector<8x96xf32>
    %56 = tpu.matmul %55, %6, %cst_36 {dimension_numbers = #tpu.dot_dimension_numbers<[1], [0], [0], [1], [0, 0, 1, 1], [], []>} : vector<8x32xf32>, vector<32x96xf32>, vector<8x96xf32> -> vector<8x96xf32>
    %57 = vector.broadcast %8 : vector<1x96xf32> to vector<8x96xf32>
    %58 = arith.addf %56, %57 : vector<8x96xf32>
    %cst_37 = arith.constant dense<0.000000e+00> : vector<8x96xf32>
    %59 = tpu.matmul %54, %7, %cst_37 {dimension_numbers = #tpu.dot_dimension_numbers<[1], [0], [0], [1], [0, 0, 1, 1], [], []>} : vector<8x32xf32>, vector<32x96xf32>, vector<8x96xf32> -> vector<8x96xf32>
    %60 = vector.broadcast %9 : vector<1x96xf32> to vector<8x96xf32>
    %61 = arith.addf %59, %60 : vector<8x96xf32>
    %62 = vector.extract_strided_slice %58 {offsets = [0, 0], sizes = [8, 64], strides = [1, 1]} : vector<8x96xf32> to vector<8x64xf32>
    %63 = vector.extract_strided_slice %61 {offsets = [0, 0], sizes = [8, 64], strides = [1, 1]} : vector<8x96xf32> to vector<8x64xf32>
    %64 = arith.addf %62, %63 : vector<8x64xf32>
    %65 = arith.negf %64 : vector<8x64xf32>
    %66 = math.exp %65 : vector<8x64xf32>
    %cst_38 = arith.constant 1.000000e+00 : f32
    %67 = vector.broadcast %cst_38 : f32 to vector<8x64xf32>
    %68 = arith.addf %67, %66 : vector<8x64xf32>
    %69 = arith.divf %67, %68 : vector<8x64xf32>
    %70 = vector.extract_strided_slice %69 {offsets = [0, 0], sizes = [8, 32], strides = [1, 1]} : vector<8x64xf32> to vector<8x32xf32>
    %71 = vector.extract_strided_slice %69 {offsets = [0, 32], sizes = [8, 32], strides = [1, 1]} : vector<8x64xf32> to vector<8x32xf32>
    %72 = vector.extract_strided_slice %58 {offsets = [0, 64], sizes = [8, 32], strides = [1, 1]} : vector<8x96xf32> to vector<8x32xf32>
    %73 = vector.extract_strided_slice %61 {offsets = [0, 64], sizes = [8, 32], strides = [1, 1]} : vector<8x96xf32> to vector<8x32xf32>
    %74 = arith.mulf %70, %73 : vector<8x32xf32>
    %75 = arith.addf %72, %74 : vector<8x32xf32>
    %76 = math.tanh %75 : vector<8x32xf32>
    %cst_39 = arith.constant 1.000000e+00 : f32
    %77 = vector.broadcast %cst_39 : f32 to vector<8x32xf32>
    %78 = arith.subf %77, %71 : vector<8x32xf32>
    %79 = arith.mulf %78, %76 : vector<8x32xf32>
    %80 = arith.mulf %71, %54 : vector<8x32xf32>
    %81 = arith.addf %79, %80 : vector<8x32xf32>
    %c0_40 = arith.constant 0 : index
    %c0_41 = arith.constant 0 : index
    %82 = vector.load %arg9[%c0_40, %c0_41] : memref<64x32xf32, #tpu.memory_space<vmem>>, vector<8x32xf32>
    tpu.vector_store %arg9[%c0_40, %c0_41], %81 {strides = array<i32>} : memref<64x32xf32, #tpu.memory_space<vmem>>, vector<8x32xf32>,
    %83 = vector.extract_strided_slice %29 {offsets = [8, 0], sizes = [8, 96], strides = [1, 1]} : vector<64x96xf32> to vector<8x96xf32>
    %cst_42 = arith.constant dense<0.000000e+00> : vector<8x96xf32>
    %84 = tpu.matmul %81, %3, %cst_42 {dimension_numbers = #tpu.dot_dimension_numbers<[1], [0], [0], [1], [0, 0, 1, 1], [], []>} : vector<8x32xf32>, vector<32x96xf32>, vector<8x96xf32> -> vector<8x96xf32>
    %85 = vector.broadcast %5 : vector<1x96xf32> to vector<8x96xf32>
    %86 = arith.addf %84, %85 : vector<8x96xf32>
    %87 = vector.extract_strided_slice %83 {offsets = [0, 0], sizes = [8, 64], strides = [1, 1]} : vector<8x96xf32> to vector<8x64xf32>
    %88 = vector.extract_strided_slice %86 {offsets = [0, 0], sizes = [8, 64], strides = [1, 1]} : vector<8x96xf32> to vector<8x64xf32>
    %89 = arith.addf %87, %88 : vector<8x64xf32>
    %90 = arith.negf %89 : vector<8x64xf32>
    %91 = math.exp %90 : vector<8x64xf32>
    %cst_43 = arith.constant 1.000000e+00 : f32
    %92 = vector.broadcast %cst_43 : f32 to vector<8x64xf32>
    %93 = arith.addf %92, %91 : vector<8x64xf32>
    %94 = arith.divf %92, %93 : vector<8x64xf32>
    %95 = vector.extract_strided_slice %94 {offsets = [0, 0], sizes = [8, 32], strides = [1, 1]} : vector<8x64xf32> to vector<8x32xf32>
    %96 = vector.extract_strided_slice %94 {offsets = [0, 32], sizes = [8, 32], strides = [1, 1]} : vector<8x64xf32> to vector<8x32xf32>
    %97 = vector.extract_strided_slice %83 {offsets = [0, 64], sizes = [8, 32], strides = [1, 1]} : vector<8x96xf32> to vector<8x32xf32>
    %98 = vector.extract_strided_slice %86 {offsets = [0, 64], sizes = [8, 32], strides = [1, 1]} : vector<8x96xf32> to vector<8x32xf32>
    %99 = arith.mulf %95, %98 : vector<8x32xf32>
    %100 = arith.addf %97, %99 : vector<8x32xf32>
    %101 = math.tanh %100 : vector<8x32xf32>
    %cst_44 = arith.constant 1.000000e+00 : f32
    %102 = vector.broadcast %cst_44 : f32 to vector<8x32xf32>
    %103 = arith.subf %102, %96 : vector<8x32xf32>
    %104 = arith.mulf %103, %101 : vector<8x32xf32>
    %105 = arith.mulf %96, %81 : vector<8x32xf32>
    %106 = arith.addf %104, %105 : vector<8x32xf32>
    %107 = arith.mulf %106, %18 : vector<8x32xf32>
    %cst_45 = arith.constant dense<0.000000e+00> : vector<8x96xf32>
    %108 = tpu.matmul %107, %6, %cst_45 {dimension_numbers = #tpu.dot_dimension_numbers<[1], [0], [0], [1], [0, 0, 1, 1], [], []>} : vector<8x32xf32>, vector<32x96xf32>, vector<8x96xf32> -> vector<8x96xf32>
    %109 = vector.broadcast %8 : vector<1x96xf32> to vector<8x96xf32>
    %110 = arith.addf %108, %109 : vector<8x96xf32>
    %cst_46 = arith.constant dense<0.000000e+00> : vector<8x96xf32>
    %111 = tpu.matmul %106, %7, %cst_46 {dimension_numbers = #tpu.dot_dimension_numbers<[1], [0], [0], [1], [0, 0, 1, 1], [], []>} : vector<8x32xf32>, vector<32x96xf32>, vector<8x96xf32> -> vector<8x96xf32>
    %112 = vector.broadcast %9 : vector<1x96xf32> to vector<8x96xf32>
    %113 = arith.addf %111, %112 : vector<8x96xf32>
    %114 = vector.extract_strided_slice %110 {offsets = [0, 0], sizes = [8, 64], strides = [1, 1]} : vector<8x96xf32> to vector<8x64xf32>
    %115 = vector.extract_strided_slice %113 {offsets = [0, 0], sizes = [8, 64], strides = [1, 1]} : vector<8x96xf32> to vector<8x64xf32>
    %116 = arith.addf %114, %115 : vector<8x64xf32>
    %117 = arith.negf %116 : vector<8x64xf32>
    %118 = math.exp %117 : vector<8x64xf32>
    %cst_47 = arith.constant 1.000000e+00 : f32
    %119 = vector.broadcast %cst_47 : f32 to vector<8x64xf32>
    %120 = arith.addf %119, %118 : vector<8x64xf32>
    %121 = arith.divf %119, %120 : vector<8x64xf32>
    %122 = vector.extract_strided_slice %121 {offsets = [0, 0], sizes = [8, 32], strides = [1, 1]} : vector<8x64xf32> to vector<8x32xf32>
    %123 = vector.extract_strided_slice %121 {offsets = [0, 32], sizes = [8, 32], strides = [1, 1]} : vector<8x64xf32> to vector<8x32xf32>
    %124 = vector.extract_strided_slice %110 {offsets = [0, 64], sizes = [8, 32], strides = [1, 1]} : vector<8x96xf32> to vector<8x32xf32>
    %125 = vector.extract_strided_slice %113 {offsets = [0, 64], sizes = [8, 32], strides = [1, 1]} : vector<8x96xf32> to vector<8x32xf32>
    %126 = arith.mulf %122, %125 : vector<8x32xf32>
    %127 = arith.addf %124, %126 : vector<8x32xf32>
    %128 = math.tanh %127 : vector<8x32xf32>
    %cst_48 = arith.constant 1.000000e+00 : f32
    %129 = vector.broadcast %cst_48 : f32 to vector<8x32xf32>
    %130 = arith.subf %129, %123 : vector<8x32xf32>
    %131 = arith.mulf %130, %128 : vector<8x32xf32>
    %132 = arith.mulf %123, %106 : vector<8x32xf32>
    %133 = arith.addf %131, %132 : vector<8x32xf32>
    %c8 = arith.constant 8 : index
    %c0_49 = arith.constant 0 : index
    %134 = vector.load %arg9[%c8, %c0_49] : memref<64x32xf32, #tpu.memory_space<vmem>>, vector<8x32xf32>
    tpu.vector_store %arg9[%c8, %c0_49], %133 {strides = array<i32>} : memref<64x32xf32, #tpu.memory_space<vmem>>, vector<8x32xf32>,
    %135 = vector.extract_strided_slice %29 {offsets = [16, 0], sizes = [8, 96], strides = [1, 1]} : vector<64x96xf32> to vector<8x96xf32>
    %cst_50 = arith.constant dense<0.000000e+00> : vector<8x96xf32>
    %136 = tpu.matmul %133, %3, %cst_50 {dimension_numbers = #tpu.dot_dimension_numbers<[1], [0], [0], [1], [0, 0, 1, 1], [], []>} : vector<8x32xf32>, vector<32x96xf32>, vector<8x96xf32> -> vector<8x96xf32>
    %137 = vector.broadcast %5 : vector<1x96xf32> to vector<8x96xf32>
    %138 = arith.addf %136, %137 : vector<8x96xf32>
    %139 = vector.extract_strided_slice %135 {offsets = [0, 0], sizes = [8, 64], strides = [1, 1]} : vector<8x96xf32> to vector<8x64xf32>
    %140 = vector.extract_strided_slice %138 {offsets = [0, 0], sizes = [8, 64], strides = [1, 1]} : vector<8x96xf32> to vector<8x64xf32>
    %141 = arith.addf %139, %140 : vector<8x64xf32>
    %142 = arith.negf %141 : vector<8x64xf32>
    %143 = math.exp %142 : vector<8x64xf32>
    %cst_51 = arith.constant 1.000000e+00 : f32
    %144 = vector.broadcast %cst_51 : f32 to vector<8x64xf32>
    %145 = arith.addf %144, %143 : vector<8x64xf32>
    %146 = arith.divf %144, %145 : vector<8x64xf32>
    %147 = vector.extract_strided_slice %146 {offsets = [0, 0], sizes = [8, 32], strides = [1, 1]} : vector<8x64xf32> to vector<8x32xf32>
    %148 = vector.extract_strided_slice %146 {offsets = [0, 32], sizes = [8, 32], strides = [1, 1]} : vector<8x64xf32> to vector<8x32xf32>
    %149 = vector.extract_strided_slice %135 {offsets = [0, 64], sizes = [8, 32], strides = [1, 1]} : vector<8x96xf32> to vector<8x32xf32>
    %150 = vector.extract_strided_slice %138 {offsets = [0, 64], sizes = [8, 32], strides = [1, 1]} : vector<8x96xf32> to vector<8x32xf32>
    %151 = arith.mulf %147, %150 : vector<8x32xf32>
    %152 = arith.addf %149, %151 : vector<8x32xf32>
    %153 = math.tanh %152 : vector<8x32xf32>
    %cst_52 = arith.constant 1.000000e+00 : f32
    %154 = vector.broadcast %cst_52 : f32 to vector<8x32xf32>
    %155 = arith.subf %154, %148 : vector<8x32xf32>
    %156 = arith.mulf %155, %153 : vector<8x32xf32>
    %157 = arith.mulf %148, %133 : vector<8x32xf32>
    %158 = arith.addf %156, %157 : vector<8x32xf32>
    %159 = arith.mulf %158, %18 : vector<8x32xf32>
    %cst_53 = arith.constant dense<0.000000e+00> : vector<8x96xf32>
    %160 = tpu.matmul %159, %6, %cst_53 {dimension_numbers = #tpu.dot_dimension_numbers<[1], [0], [0], [1], [0, 0, 1, 1], [], []>} : vector<8x32xf32>, vector<32x96xf32>, vector<8x96xf32> -> vector<8x96xf32>
    %161 = vector.broadcast %8 : vector<1x96xf32> to vector<8x96xf32>
    %162 = arith.addf %160, %161 : vector<8x96xf32>
    %cst_54 = arith.constant dense<0.000000e+00> : vector<8x96xf32>
    %163 = tpu.matmul %158, %7, %cst_54 {dimension_numbers = #tpu.dot_dimension_numbers<[1], [0], [0], [1], [0, 0, 1, 1], [], []>} : vector<8x32xf32>, vector<32x96xf32>, vector<8x96xf32> -> vector<8x96xf32>
    %164 = vector.broadcast %9 : vector<1x96xf32> to vector<8x96xf32>
    %165 = arith.addf %163, %164 : vector<8x96xf32>
    %166 = vector.extract_strided_slice %162 {offsets = [0, 0], sizes = [8, 64], strides = [1, 1]} : vector<8x96xf32> to vector<8x64xf32>
    %167 = vector.extract_strided_slice %165 {offsets = [0, 0], sizes = [8, 64], strides = [1, 1]} : vector<8x96xf32> to vector<8x64xf32>
    %168 = arith.addf %166, %167 : vector<8x64xf32>
    %169 = arith.negf %168 : vector<8x64xf32>
    %170 = math.exp %169 : vector<8x64xf32>
    %cst_55 = arith.constant 1.000000e+00 : f32
    %171 = vector.broadcast %cst_55 : f32 to vector<8x64xf32>
    %172 = arith.addf %171, %170 : vector<8x64xf32>
    %173 = arith.divf %171, %172 : vector<8x64xf32>
    %174 = vector.extract_strided_slice %173 {offsets = [0, 0], sizes = [8, 32], strides = [1, 1]} : vector<8x64xf32> to vector<8x32xf32>
    %175 = vector.extract_strided_slice %173 {offsets = [0, 32], sizes = [8, 32], strides = [1, 1]} : vector<8x64xf32> to vector<8x32xf32>
    %176 = vector.extract_strided_slice %162 {offsets = [0, 64], sizes = [8, 32], strides = [1, 1]} : vector<8x96xf32> to vector<8x32xf32>
    %177 = vector.extract_strided_slice %165 {offsets = [0, 64], sizes = [8, 32], strides = [1, 1]} : vector<8x96xf32> to vector<8x32xf32>
    %178 = arith.mulf %174, %177 : vector<8x32xf32>
    %179 = arith.addf %176, %178 : vector<8x32xf32>
    %180 = math.tanh %179 : vector<8x32xf32>
    %cst_56 = arith.constant 1.000000e+00 : f32
    %181 = vector.broadcast %cst_56 : f32 to vector<8x32xf32>
    %182 = arith.subf %181, %175 : vector<8x32xf32>
    %183 = arith.mulf %182, %180 : vector<8x32xf32>
    %184 = arith.mulf %175, %158 : vector<8x32xf32>
    %185 = arith.addf %183, %184 : vector<8x32xf32>
    %c16 = arith.constant 16 : index
    %c0_57 = arith.constant 0 : index
    %186 = vector.load %arg9[%c16, %c0_57] : memref<64x32xf32, #tpu.memory_space<vmem>>, vector<8x32xf32>
    tpu.vector_store %arg9[%c16, %c0_57], %185 {strides = array<i32>} : memref<64x32xf32, #tpu.memory_space<vmem>>, vector<8x32xf32>,
    %187 = vector.extract_strided_slice %29 {offsets = [24, 0], sizes = [8, 96], strides = [1, 1]} : vector<64x96xf32> to vector<8x96xf32>
    %cst_58 = arith.constant dense<0.000000e+00> : vector<8x96xf32>
    %188 = tpu.matmul %185, %3, %cst_58 {dimension_numbers = #tpu.dot_dimension_numbers<[1], [0], [0], [1], [0, 0, 1, 1], [], []>} : vector<8x32xf32>, vector<32x96xf32>, vector<8x96xf32> -> vector<8x96xf32>
    %189 = vector.broadcast %5 : vector<1x96xf32> to vector<8x96xf32>
    %190 = arith.addf %188, %189 : vector<8x96xf32>
    %191 = vector.extract_strided_slice %187 {offsets = [0, 0], sizes = [8, 64], strides = [1, 1]} : vector<8x96xf32> to vector<8x64xf32>
    %192 = vector.extract_strided_slice %190 {offsets = [0, 0], sizes = [8, 64], strides = [1, 1]} : vector<8x96xf32> to vector<8x64xf32>
    %193 = arith.addf %191, %192 : vector<8x64xf32>
    %194 = arith.negf %193 : vector<8x64xf32>
    %195 = math.exp %194 : vector<8x64xf32>
    %cst_59 = arith.constant 1.000000e+00 : f32
    %196 = vector.broadcast %cst_59 : f32 to vector<8x64xf32>
    %197 = arith.addf %196, %195 : vector<8x64xf32>
    %198 = arith.divf %196, %197 : vector<8x64xf32>
    %199 = vector.extract_strided_slice %198 {offsets = [0, 0], sizes = [8, 32], strides = [1, 1]} : vector<8x64xf32> to vector<8x32xf32>
    %200 = vector.extract_strided_slice %198 {offsets = [0, 32], sizes = [8, 32], strides = [1, 1]} : vector<8x64xf32> to vector<8x32xf32>
    %201 = vector.extract_strided_slice %187 {offsets = [0, 64], sizes = [8, 32], strides = [1, 1]} : vector<8x96xf32> to vector<8x32xf32>
    %202 = vector.extract_strided_slice %190 {offsets = [0, 64], sizes = [8, 32], strides = [1, 1]} : vector<8x96xf32> to vector<8x32xf32>
    %203 = arith.mulf %199, %202 : vector<8x32xf32>
    %204 = arith.addf %201, %203 : vector<8x32xf32>
    %205 = math.tanh %204 : vector<8x32xf32>
    %cst_60 = arith.constant 1.000000e+00 : f32
    %206 = vector.broadcast %cst_60 : f32 to vector<8x32xf32>
    %207 = arith.subf %206, %200 : vector<8x32xf32>
    %208 = arith.mulf %207, %205 : vector<8x32xf32>
    %209 = arith.mulf %200, %185 : vector<8x32xf32>
    %210 = arith.addf %208, %209 : vector<8x32xf32>
    %211 = arith.mulf %210, %18 : vector<8x32xf32>
    %cst_61 = arith.constant dense<0.000000e+00> : vector<8x96xf32>
    %212 = tpu.matmul %211, %6, %cst_61 {dimension_numbers = #tpu.dot_dimension_numbers<[1], [0], [0], [1], [0, 0, 1, 1], [], []>} : vector<8x32xf32>, vector<32x96xf32>, vector<8x96xf32> -> vector<8x96xf32>
    %213 = vector.broadcast %8 : vector<1x96xf32> to vector<8x96xf32>
    %214 = arith.addf %212, %213 : vector<8x96xf32>
    %cst_62 = arith.constant dense<0.000000e+00> : vector<8x96xf32>
    %215 = tpu.matmul %210, %7, %cst_62 {dimension_numbers = #tpu.dot_dimension_numbers<[1], [0], [0], [1], [0, 0, 1, 1], [], []>} : vector<8x32xf32>, vector<32x96xf32>, vector<8x96xf32> -> vector<8x96xf32>
    %216 = vector.broadcast %9 : vector<1x96xf32> to vector<8x96xf32>
    %217 = arith.addf %215, %216 : vector<8x96xf32>
    %218 = vector.extract_strided_slice %214 {offsets = [0, 0], sizes = [8, 64], strides = [1, 1]} : vector<8x96xf32> to vector<8x64xf32>
    %219 = vector.extract_strided_slice %217 {offsets = [0, 0], sizes = [8, 64], strides = [1, 1]} : vector<8x96xf32> to vector<8x64xf32>
    %220 = arith.addf %218, %219 : vector<8x64xf32>
    %221 = arith.negf %220 : vector<8x64xf32>
    %222 = math.exp %221 : vector<8x64xf32>
    %cst_63 = arith.constant 1.000000e+00 : f32
    %223 = vector.broadcast %cst_63 : f32 to vector<8x64xf32>
    %224 = arith.addf %223, %222 : vector<8x64xf32>
    %225 = arith.divf %223, %224 : vector<8x64xf32>
    %226 = vector.extract_strided_slice %225 {offsets = [0, 0], sizes = [8, 32], strides = [1, 1]} : vector<8x64xf32> to vector<8x32xf32>
    %227 = vector.extract_strided_slice %225 {offsets = [0, 32], sizes = [8, 32], strides = [1, 1]} : vector<8x64xf32> to vector<8x32xf32>
    %228 = vector.extract_strided_slice %214 {offsets = [0, 64], sizes = [8, 32], strides = [1, 1]} : vector<8x96xf32> to vector<8x32xf32>
    %229 = vector.extract_strided_slice %217 {offsets = [0, 64], sizes = [8, 32], strides = [1, 1]} : vector<8x96xf32> to vector<8x32xf32>
    %230 = arith.mulf %226, %229 : vector<8x32xf32>
    %231 = arith.addf %228, %230 : vector<8x32xf32>
    %232 = math.tanh %231 : vector<8x32xf32>
    %cst_64 = arith.constant 1.000000e+00 : f32
    %233 = vector.broadcast %cst_64 : f32 to vector<8x32xf32>
    %234 = arith.subf %233, %227 : vector<8x32xf32>
    %235 = arith.mulf %234, %232 : vector<8x32xf32>
    %236 = arith.mulf %227, %210 : vector<8x32xf32>
    %237 = arith.addf %235, %236 : vector<8x32xf32>
    %c24 = arith.constant 24 : index
    %c0_65 = arith.constant 0 : index
    %238 = vector.load %arg9[%c24, %c0_65] : memref<64x32xf32, #tpu.memory_space<vmem>>, vector<8x32xf32>
    tpu.vector_store %arg9[%c24, %c0_65], %237 {strides = array<i32>} : memref<64x32xf32, #tpu.memory_space<vmem>>, vector<8x32xf32>,
    %239 = vector.extract_strided_slice %29 {offsets = [32, 0], sizes = [8, 96], strides = [1, 1]} : vector<64x96xf32> to vector<8x96xf32>
    %cst_66 = arith.constant dense<0.000000e+00> : vector<8x96xf32>
    %240 = tpu.matmul %237, %3, %cst_66 {dimension_numbers = #tpu.dot_dimension_numbers<[1], [0], [0], [1], [0, 0, 1, 1], [], []>} : vector<8x32xf32>, vector<32x96xf32>, vector<8x96xf32> -> vector<8x96xf32>
    %241 = vector.broadcast %5 : vector<1x96xf32> to vector<8x96xf32>
    %242 = arith.addf %240, %241 : vector<8x96xf32>
    %243 = vector.extract_strided_slice %239 {offsets = [0, 0], sizes = [8, 64], strides = [1, 1]} : vector<8x96xf32> to vector<8x64xf32>
    %244 = vector.extract_strided_slice %242 {offsets = [0, 0], sizes = [8, 64], strides = [1, 1]} : vector<8x96xf32> to vector<8x64xf32>
    %245 = arith.addf %243, %244 : vector<8x64xf32>
    %246 = arith.negf %245 : vector<8x64xf32>
    %247 = math.exp %246 : vector<8x64xf32>
    %cst_67 = arith.constant 1.000000e+00 : f32
    %248 = vector.broadcast %cst_67 : f32 to vector<8x64xf32>
    %249 = arith.addf %248, %247 : vector<8x64xf32>
    %250 = arith.divf %248, %249 : vector<8x64xf32>
    %251 = vector.extract_strided_slice %250 {offsets = [0, 0], sizes = [8, 32], strides = [1, 1]} : vector<8x64xf32> to vector<8x32xf32>
    %252 = vector.extract_strided_slice %250 {offsets = [0, 32], sizes = [8, 32], strides = [1, 1]} : vector<8x64xf32> to vector<8x32xf32>
    %253 = vector.extract_strided_slice %239 {offsets = [0, 64], sizes = [8, 32], strides = [1, 1]} : vector<8x96xf32> to vector<8x32xf32>
    %254 = vector.extract_strided_slice %242 {offsets = [0, 64], sizes = [8, 32], strides = [1, 1]} : vector<8x96xf32> to vector<8x32xf32>
    %255 = arith.mulf %251, %254 : vector<8x32xf32>
    %256 = arith.addf %253, %255 : vector<8x32xf32>
    %257 = math.tanh %256 : vector<8x32xf32>
    %cst_68 = arith.constant 1.000000e+00 : f32
    %258 = vector.broadcast %cst_68 : f32 to vector<8x32xf32>
    %259 = arith.subf %258, %252 : vector<8x32xf32>
    %260 = arith.mulf %259, %257 : vector<8x32xf32>
    %261 = arith.mulf %252, %237 : vector<8x32xf32>
    %262 = arith.addf %260, %261 : vector<8x32xf32>
    %263 = arith.mulf %262, %18 : vector<8x32xf32>
    %cst_69 = arith.constant dense<0.000000e+00> : vector<8x96xf32>
    %264 = tpu.matmul %263, %6, %cst_69 {dimension_numbers = #tpu.dot_dimension_numbers<[1], [0], [0], [1], [0, 0, 1, 1], [], []>} : vector<8x32xf32>, vector<32x96xf32>, vector<8x96xf32> -> vector<8x96xf32>
    %265 = vector.broadcast %8 : vector<1x96xf32> to vector<8x96xf32>
    %266 = arith.addf %264, %265 : vector<8x96xf32>
    %cst_70 = arith.constant dense<0.000000e+00> : vector<8x96xf32>
    %267 = tpu.matmul %262, %7, %cst_70 {dimension_numbers = #tpu.dot_dimension_numbers<[1], [0], [0], [1], [0, 0, 1, 1], [], []>} : vector<8x32xf32>, vector<32x96xf32>, vector<8x96xf32> -> vector<8x96xf32>
    %268 = vector.broadcast %9 : vector<1x96xf32> to vector<8x96xf32>
    %269 = arith.addf %267, %268 : vector<8x96xf32>
    %270 = vector.extract_strided_slice %266 {offsets = [0, 0], sizes = [8, 64], strides = [1, 1]} : vector<8x96xf32> to vector<8x64xf32>
    %271 = vector.extract_strided_slice %269 {offsets = [0, 0], sizes = [8, 64], strides = [1, 1]} : vector<8x96xf32> to vector<8x64xf32>
    %272 = arith.addf %270, %271 : vector<8x64xf32>
    %273 = arith.negf %272 : vector<8x64xf32>
    %274 = math.exp %273 : vector<8x64xf32>
    %cst_71 = arith.constant 1.000000e+00 : f32
    %275 = vector.broadcast %cst_71 : f32 to vector<8x64xf32>
    %276 = arith.addf %275, %274 : vector<8x64xf32>
    %277 = arith.divf %275, %276 : vector<8x64xf32>
    %278 = vector.extract_strided_slice %277 {offsets = [0, 0], sizes = [8, 32], strides = [1, 1]} : vector<8x64xf32> to vector<8x32xf32>
    %279 = vector.extract_strided_slice %277 {offsets = [0, 32], sizes = [8, 32], strides = [1, 1]} : vector<8x64xf32> to vector<8x32xf32>
    %280 = vector.extract_strided_slice %266 {offsets = [0, 64], sizes = [8, 32], strides = [1, 1]} : vector<8x96xf32> to vector<8x32xf32>
    %281 = vector.extract_strided_slice %269 {offsets = [0, 64], sizes = [8, 32], strides = [1, 1]} : vector<8x96xf32> to vector<8x32xf32>
    %282 = arith.mulf %278, %281 : vector<8x32xf32>
    %283 = arith.addf %280, %282 : vector<8x32xf32>
    %284 = math.tanh %283 : vector<8x32xf32>
    %cst_72 = arith.constant 1.000000e+00 : f32
    %285 = vector.broadcast %cst_72 : f32 to vector<8x32xf32>
    %286 = arith.subf %285, %279 : vector<8x32xf32>
    %287 = arith.mulf %286, %284 : vector<8x32xf32>
    %288 = arith.mulf %279, %262 : vector<8x32xf32>
    %289 = arith.addf %287, %288 : vector<8x32xf32>
    %c32_73 = arith.constant 32 : index
    %c0_74 = arith.constant 0 : index
    %290 = vector.load %arg9[%c32_73, %c0_74] : memref<64x32xf32, #tpu.memory_space<vmem>>, vector<8x32xf32>
    tpu.vector_store %arg9[%c32_73, %c0_74], %289 {strides = array<i32>} : memref<64x32xf32, #tpu.memory_space<vmem>>, vector<8x32xf32>,
    %291 = vector.extract_strided_slice %29 {offsets = [40, 0], sizes = [8, 96], strides = [1, 1]} : vector<64x96xf32> to vector<8x96xf32>
    %cst_75 = arith.constant dense<0.000000e+00> : vector<8x96xf32>
    %292 = tpu.matmul %289, %3, %cst_75 {dimension_numbers = #tpu.dot_dimension_numbers<[1], [0], [0], [1], [0, 0, 1, 1], [], []>} : vector<8x32xf32>, vector<32x96xf32>, vector<8x96xf32> -> vector<8x96xf32>
    %293 = vector.broadcast %5 : vector<1x96xf32> to vector<8x96xf32>
    %294 = arith.addf %292, %293 : vector<8x96xf32>
    %295 = vector.extract_strided_slice %291 {offsets = [0, 0], sizes = [8, 64], strides = [1, 1]} : vector<8x96xf32> to vector<8x64xf32>
    %296 = vector.extract_strided_slice %294 {offsets = [0, 0], sizes = [8, 64], strides = [1, 1]} : vector<8x96xf32> to vector<8x64xf32>
    %297 = arith.addf %295, %296 : vector<8x64xf32>
    %298 = arith.negf %297 : vector<8x64xf32>
    %299 = math.exp %298 : vector<8x64xf32>
    %cst_76 = arith.constant 1.000000e+00 : f32
    %300 = vector.broadcast %cst_76 : f32 to vector<8x64xf32>
    %301 = arith.addf %300, %299 : vector<8x64xf32>
    %302 = arith.divf %300, %301 : vector<8x64xf32>
    %303 = vector.extract_strided_slice %302 {offsets = [0, 0], sizes = [8, 32], strides = [1, 1]} : vector<8x64xf32> to vector<8x32xf32>
    %304 = vector.extract_strided_slice %302 {offsets = [0, 32], sizes = [8, 32], strides = [1, 1]} : vector<8x64xf32> to vector<8x32xf32>
    %305 = vector.extract_strided_slice %291 {offsets = [0, 64], sizes = [8, 32], strides = [1, 1]} : vector<8x96xf32> to vector<8x32xf32>
    %306 = vector.extract_strided_slice %294 {offsets = [0, 64], sizes = [8, 32], strides = [1, 1]} : vector<8x96xf32> to vector<8x32xf32>
    %307 = arith.mulf %303, %306 : vector<8x32xf32>
    %308 = arith.addf %305, %307 : vector<8x32xf32>
    %309 = math.tanh %308 : vector<8x32xf32>
    %cst_77 = arith.constant 1.000000e+00 : f32
    %310 = vector.broadcast %cst_77 : f32 to vector<8x32xf32>
    %311 = arith.subf %310, %304 : vector<8x32xf32>
    %312 = arith.mulf %311, %309 : vector<8x32xf32>
    %313 = arith.mulf %304, %289 : vector<8x32xf32>
    %314 = arith.addf %312, %313 : vector<8x32xf32>
    %315 = arith.mulf %314, %18 : vector<8x32xf32>
    %cst_78 = arith.constant dense<0.000000e+00> : vector<8x96xf32>
    %316 = tpu.matmul %315, %6, %cst_78 {dimension_numbers = #tpu.dot_dimension_numbers<[1], [0], [0], [1], [0, 0, 1, 1], [], []>} : vector<8x32xf32>, vector<32x96xf32>, vector<8x96xf32> -> vector<8x96xf32>
    %317 = vector.broadcast %8 : vector<1x96xf32> to vector<8x96xf32>
    %318 = arith.addf %316, %317 : vector<8x96xf32>
    %cst_79 = arith.constant dense<0.000000e+00> : vector<8x96xf32>
    %319 = tpu.matmul %314, %7, %cst_79 {dimension_numbers = #tpu.dot_dimension_numbers<[1], [0], [0], [1], [0, 0, 1, 1], [], []>} : vector<8x32xf32>, vector<32x96xf32>, vector<8x96xf32> -> vector<8x96xf32>
    %320 = vector.broadcast %9 : vector<1x96xf32> to vector<8x96xf32>
    %321 = arith.addf %319, %320 : vector<8x96xf32>
    %322 = vector.extract_strided_slice %318 {offsets = [0, 0], sizes = [8, 64], strides = [1, 1]} : vector<8x96xf32> to vector<8x64xf32>
    %323 = vector.extract_strided_slice %321 {offsets = [0, 0], sizes = [8, 64], strides = [1, 1]} : vector<8x96xf32> to vector<8x64xf32>
    %324 = arith.addf %322, %323 : vector<8x64xf32>
    %325 = arith.negf %324 : vector<8x64xf32>
    %326 = math.exp %325 : vector<8x64xf32>
    %cst_80 = arith.constant 1.000000e+00 : f32
    %327 = vector.broadcast %cst_80 : f32 to vector<8x64xf32>
    %328 = arith.addf %327, %326 : vector<8x64xf32>
    %329 = arith.divf %327, %328 : vector<8x64xf32>
    %330 = vector.extract_strided_slice %329 {offsets = [0, 0], sizes = [8, 32], strides = [1, 1]} : vector<8x64xf32> to vector<8x32xf32>
    %331 = vector.extract_strided_slice %329 {offsets = [0, 32], sizes = [8, 32], strides = [1, 1]} : vector<8x64xf32> to vector<8x32xf32>
    %332 = vector.extract_strided_slice %318 {offsets = [0, 64], sizes = [8, 32], strides = [1, 1]} : vector<8x96xf32> to vector<8x32xf32>
    %333 = vector.extract_strided_slice %321 {offsets = [0, 64], sizes = [8, 32], strides = [1, 1]} : vector<8x96xf32> to vector<8x32xf32>
    %334 = arith.mulf %330, %333 : vector<8x32xf32>
    %335 = arith.addf %332, %334 : vector<8x32xf32>
    %336 = math.tanh %335 : vector<8x32xf32>
    %cst_81 = arith.constant 1.000000e+00 : f32
    %337 = vector.broadcast %cst_81 : f32 to vector<8x32xf32>
    %338 = arith.subf %337, %331 : vector<8x32xf32>
    %339 = arith.mulf %338, %336 : vector<8x32xf32>
    %340 = arith.mulf %331, %314 : vector<8x32xf32>
    %341 = arith.addf %339, %340 : vector<8x32xf32>
    %c40 = arith.constant 40 : index
    %c0_82 = arith.constant 0 : index
    %342 = vector.load %arg9[%c40, %c0_82] : memref<64x32xf32, #tpu.memory_space<vmem>>, vector<8x32xf32>
    tpu.vector_store %arg9[%c40, %c0_82], %341 {strides = array<i32>} : memref<64x32xf32, #tpu.memory_space<vmem>>, vector<8x32xf32>,
    %343 = vector.extract_strided_slice %29 {offsets = [48, 0], sizes = [8, 96], strides = [1, 1]} : vector<64x96xf32> to vector<8x96xf32>
    %cst_83 = arith.constant dense<0.000000e+00> : vector<8x96xf32>
    %344 = tpu.matmul %341, %3, %cst_83 {dimension_numbers = #tpu.dot_dimension_numbers<[1], [0], [0], [1], [0, 0, 1, 1], [], []>} : vector<8x32xf32>, vector<32x96xf32>, vector<8x96xf32> -> vector<8x96xf32>
    %345 = vector.broadcast %5 : vector<1x96xf32> to vector<8x96xf32>
    %346 = arith.addf %344, %345 : vector<8x96xf32>
    %347 = vector.extract_strided_slice %343 {offsets = [0, 0], sizes = [8, 64], strides = [1, 1]} : vector<8x96xf32> to vector<8x64xf32>
    %348 = vector.extract_strided_slice %346 {offsets = [0, 0], sizes = [8, 64], strides = [1, 1]} : vector<8x96xf32> to vector<8x64xf32>
    %349 = arith.addf %347, %348 : vector<8x64xf32>
    %350 = arith.negf %349 : vector<8x64xf32>
    %351 = math.exp %350 : vector<8x64xf32>
    %cst_84 = arith.constant 1.000000e+00 : f32
    %352 = vector.broadcast %cst_84 : f32 to vector<8x64xf32>
    %353 = arith.addf %352, %351 : vector<8x64xf32>
    %354 = arith.divf %352, %353 : vector<8x64xf32>
    %355 = vector.extract_strided_slice %354 {offsets = [0, 0], sizes = [8, 32], strides = [1, 1]} : vector<8x64xf32> to vector<8x32xf32>
    %356 = vector.extract_strided_slice %354 {offsets = [0, 32], sizes = [8, 32], strides = [1, 1]} : vector<8x64xf32> to vector<8x32xf32>
    %357 = vector.extract_strided_slice %343 {offsets = [0, 64], sizes = [8, 32], strides = [1, 1]} : vector<8x96xf32> to vector<8x32xf32>
    %358 = vector.extract_strided_slice %346 {offsets = [0, 64], sizes = [8, 32], strides = [1, 1]} : vector<8x96xf32> to vector<8x32xf32>
    %359 = arith.mulf %355, %358 : vector<8x32xf32>
    %360 = arith.addf %357, %359 : vector<8x32xf32>
    %361 = math.tanh %360 : vector<8x32xf32>
    %cst_85 = arith.constant 1.000000e+00 : f32
    %362 = vector.broadcast %cst_85 : f32 to vector<8x32xf32>
    %363 = arith.subf %362, %356 : vector<8x32xf32>
    %364 = arith.mulf %363, %361 : vector<8x32xf32>
    %365 = arith.mulf %356, %341 : vector<8x32xf32>
    %366 = arith.addf %364, %365 : vector<8x32xf32>
    %367 = arith.mulf %366, %18 : vector<8x32xf32>
    %cst_86 = arith.constant dense<0.000000e+00> : vector<8x96xf32>
    %368 = tpu.matmul %367, %6, %cst_86 {dimension_numbers = #tpu.dot_dimension_numbers<[1], [0], [0], [1], [0, 0, 1, 1], [], []>} : vector<8x32xf32>, vector<32x96xf32>, vector<8x96xf32> -> vector<8x96xf32>
    %369 = vector.broadcast %8 : vector<1x96xf32> to vector<8x96xf32>
    %370 = arith.addf %368, %369 : vector<8x96xf32>
    %cst_87 = arith.constant dense<0.000000e+00> : vector<8x96xf32>
    %371 = tpu.matmul %366, %7, %cst_87 {dimension_numbers = #tpu.dot_dimension_numbers<[1], [0], [0], [1], [0, 0, 1, 1], [], []>} : vector<8x32xf32>, vector<32x96xf32>, vector<8x96xf32> -> vector<8x96xf32>
    %372 = vector.broadcast %9 : vector<1x96xf32> to vector<8x96xf32>
    %373 = arith.addf %371, %372 : vector<8x96xf32>
    %374 = vector.extract_strided_slice %370 {offsets = [0, 0], sizes = [8, 64], strides = [1, 1]} : vector<8x96xf32> to vector<8x64xf32>
    %375 = vector.extract_strided_slice %373 {offsets = [0, 0], sizes = [8, 64], strides = [1, 1]} : vector<8x96xf32> to vector<8x64xf32>
    %376 = arith.addf %374, %375 : vector<8x64xf32>
    %377 = arith.negf %376 : vector<8x64xf32>
    %378 = math.exp %377 : vector<8x64xf32>
    %cst_88 = arith.constant 1.000000e+00 : f32
    %379 = vector.broadcast %cst_88 : f32 to vector<8x64xf32>
    %380 = arith.addf %379, %378 : vector<8x64xf32>
    %381 = arith.divf %379, %380 : vector<8x64xf32>
    %382 = vector.extract_strided_slice %381 {offsets = [0, 0], sizes = [8, 32], strides = [1, 1]} : vector<8x64xf32> to vector<8x32xf32>
    %383 = vector.extract_strided_slice %381 {offsets = [0, 32], sizes = [8, 32], strides = [1, 1]} : vector<8x64xf32> to vector<8x32xf32>
    %384 = vector.extract_strided_slice %370 {offsets = [0, 64], sizes = [8, 32], strides = [1, 1]} : vector<8x96xf32> to vector<8x32xf32>
    %385 = vector.extract_strided_slice %373 {offsets = [0, 64], sizes = [8, 32], strides = [1, 1]} : vector<8x96xf32> to vector<8x32xf32>
    %386 = arith.mulf %382, %385 : vector<8x32xf32>
    %387 = arith.addf %384, %386 : vector<8x32xf32>
    %388 = math.tanh %387 : vector<8x32xf32>
    %cst_89 = arith.constant 1.000000e+00 : f32
    %389 = vector.broadcast %cst_89 : f32 to vector<8x32xf32>
    %390 = arith.subf %389, %383 : vector<8x32xf32>
    %391 = arith.mulf %390, %388 : vector<8x32xf32>
    %392 = arith.mulf %383, %366 : vector<8x32xf32>
    %393 = arith.addf %391, %392 : vector<8x32xf32>
    %c48 = arith.constant 48 : index
    %c0_90 = arith.constant 0 : index
    %394 = vector.load %arg9[%c48, %c0_90] : memref<64x32xf32, #tpu.memory_space<vmem>>, vector<8x32xf32>
    tpu.vector_store %arg9[%c48, %c0_90], %393 {strides = array<i32>} : memref<64x32xf32, #tpu.memory_space<vmem>>, vector<8x32xf32>,
    %395 = vector.extract_strided_slice %29 {offsets = [56, 0], sizes = [8, 96], strides = [1, 1]} : vector<64x96xf32> to vector<8x96xf32>
    %cst_91 = arith.constant dense<0.000000e+00> : vector<8x96xf32>
    %396 = tpu.matmul %393, %3, %cst_91 {dimension_numbers = #tpu.dot_dimension_numbers<[1], [0], [0], [1], [0, 0, 1, 1], [], []>} : vector<8x32xf32>, vector<32x96xf32>, vector<8x96xf32> -> vector<8x96xf32>
    %397 = vector.broadcast %5 : vector<1x96xf32> to vector<8x96xf32>
    %398 = arith.addf %396, %397 : vector<8x96xf32>
    %399 = vector.extract_strided_slice %395 {offsets = [0, 0], sizes = [8, 64], strides = [1, 1]} : vector<8x96xf32> to vector<8x64xf32>
    %400 = vector.extract_strided_slice %398 {offsets = [0, 0], sizes = [8, 64], strides = [1, 1]} : vector<8x96xf32> to vector<8x64xf32>
    %401 = arith.addf %399, %400 : vector<8x64xf32>
    %402 = arith.negf %401 : vector<8x64xf32>
    %403 = math.exp %402 : vector<8x64xf32>
    %cst_92 = arith.constant 1.000000e+00 : f32
    %404 = vector.broadcast %cst_92 : f32 to vector<8x64xf32>
    %405 = arith.addf %404, %403 : vector<8x64xf32>
    %406 = arith.divf %404, %405 : vector<8x64xf32>
    %407 = vector.extract_strided_slice %406 {offsets = [0, 0], sizes = [8, 32], strides = [1, 1]} : vector<8x64xf32> to vector<8x32xf32>
    %408 = vector.extract_strided_slice %406 {offsets = [0, 32], sizes = [8, 32], strides = [1, 1]} : vector<8x64xf32> to vector<8x32xf32>
    %409 = vector.extract_strided_slice %395 {offsets = [0, 64], sizes = [8, 32], strides = [1, 1]} : vector<8x96xf32> to vector<8x32xf32>
    %410 = vector.extract_strided_slice %398 {offsets = [0, 64], sizes = [8, 32], strides = [1, 1]} : vector<8x96xf32> to vector<8x32xf32>
    %411 = arith.mulf %407, %410 : vector<8x32xf32>
    %412 = arith.addf %409, %411 : vector<8x32xf32>
    %413 = math.tanh %412 : vector<8x32xf32>
    %cst_93 = arith.constant 1.000000e+00 : f32
    %414 = vector.broadcast %cst_93 : f32 to vector<8x32xf32>
    %415 = arith.subf %414, %408 : vector<8x32xf32>
    %416 = arith.mulf %415, %413 : vector<8x32xf32>
    %417 = arith.mulf %408, %393 : vector<8x32xf32>
    %418 = arith.addf %416, %417 : vector<8x32xf32>
    %419 = arith.mulf %418, %18 : vector<8x32xf32>
    %cst_94 = arith.constant dense<0.000000e+00> : vector<8x96xf32>
    %420 = tpu.matmul %419, %6, %cst_94 {dimension_numbers = #tpu.dot_dimension_numbers<[1], [0], [0], [1], [0, 0, 1, 1], [], []>} : vector<8x32xf32>, vector<32x96xf32>, vector<8x96xf32> -> vector<8x96xf32>
    %421 = vector.broadcast %8 : vector<1x96xf32> to vector<8x96xf32>
    %422 = arith.addf %420, %421 : vector<8x96xf32>
    %cst_95 = arith.constant dense<0.000000e+00> : vector<8x96xf32>
    %423 = tpu.matmul %418, %7, %cst_95 {dimension_numbers = #tpu.dot_dimension_numbers<[1], [0], [0], [1], [0, 0, 1, 1], [], []>} : vector<8x32xf32>, vector<32x96xf32>, vector<8x96xf32> -> vector<8x96xf32>
    %424 = vector.broadcast %9 : vector<1x96xf32> to vector<8x96xf32>
    %425 = arith.addf %423, %424 : vector<8x96xf32>
    %426 = vector.extract_strided_slice %422 {offsets = [0, 0], sizes = [8, 64], strides = [1, 1]} : vector<8x96xf32> to vector<8x64xf32>
    %427 = vector.extract_strided_slice %425 {offsets = [0, 0], sizes = [8, 64], strides = [1, 1]} : vector<8x96xf32> to vector<8x64xf32>
    %428 = arith.addf %426, %427 : vector<8x64xf32>
    %429 = arith.negf %428 : vector<8x64xf32>
    %430 = math.exp %429 : vector<8x64xf32>
    %cst_96 = arith.constant 1.000000e+00 : f32
    %431 = vector.broadcast %cst_96 : f32 to vector<8x64xf32>
    %432 = arith.addf %431, %430 : vector<8x64xf32>
    %433 = arith.divf %431, %432 : vector<8x64xf32>
    %434 = vector.extract_strided_slice %433 {offsets = [0, 0], sizes = [8, 32], strides = [1, 1]} : vector<8x64xf32> to vector<8x32xf32>
    %435 = vector.extract_strided_slice %433 {offsets = [0, 32], sizes = [8, 32], strides = [1, 1]} : vector<8x64xf32> to vector<8x32xf32>
    %436 = vector.extract_strided_slice %422 {offsets = [0, 64], sizes = [8, 32], strides = [1, 1]} : vector<8x96xf32> to vector<8x32xf32>
    %437 = vector.extract_strided_slice %425 {offsets = [0, 64], sizes = [8, 32], strides = [1, 1]} : vector<8x96xf32> to vector<8x32xf32>
    %438 = arith.mulf %434, %437 : vector<8x32xf32>
    %439 = arith.addf %436, %438 : vector<8x32xf32>
    %440 = math.tanh %439 : vector<8x32xf32>
    %cst_97 = arith.constant 1.000000e+00 : f32
    %441 = vector.broadcast %cst_97 : f32 to vector<8x32xf32>
    %442 = arith.subf %441, %435 : vector<8x32xf32>
    %443 = arith.mulf %442, %440 : vector<8x32xf32>
    %444 = arith.mulf %435, %418 : vector<8x32xf32>
    %445 = arith.addf %443, %444 : vector<8x32xf32>
    %c56 = arith.constant 56 : index
    %c0_98 = arith.constant 0 : index
    %446 = vector.load %arg9[%c56, %c0_98] : memref<64x32xf32, #tpu.memory_space<vmem>>, vector<8x32xf32>
    tpu.vector_store %arg9[%c56, %c0_98], %445 {strides = array<i32>} : memref<64x32xf32, #tpu.memory_space<vmem>>, vector<8x32xf32>,
    %c0_99 = arith.constant 0 : index
    %c0_100 = arith.constant 0 : index
    %447 = vector.load %arg9[%c0_99, %c0_100] : memref<64x32xf32, #tpu.memory_space<vmem>>, vector<64x32xf32>
    %cst_101 = arith.constant dense<0.000000e+00> : vector<64x32xf32>
    %448 = tpu.matmul %447, %10, %cst_101 {dimension_numbers = #tpu.dot_dimension_numbers<[1], [0], [0], [1], [0, 0, 1, 1], [], []>} : vector<64x32xf32>, vector<32x32xf32>, vector<64x32xf32> -> vector<64x32xf32>
    %449 = vector.broadcast %11 : vector<1x32xf32> to vector<64x32xf32>
    %450 = arith.addf %448, %449 : vector<64x32xf32>
    %451 = math.tanh %450 : vector<64x32xf32>
    %cst_102 = arith.constant dense<0.000000e+00> : vector<64x128xf32>
    %452 = tpu.matmul %451, %12, %cst_102 {dimension_numbers = #tpu.dot_dimension_numbers<[1], [0], [0], [1], [0, 0, 1, 1], [], []>} : vector<64x32xf32>, vector<32x128xf32>, vector<64x128xf32> -> vector<64x128xf32>
    %453 = vector.broadcast %13 : vector<1x128xf32> to vector<64x128xf32>
    %454 = arith.addf %452, %453 : vector<64x128xf32>
    %cst_103 = arith.constant dense<0xFF800000> : vector<64xf32>
    %455 = vector.multi_reduction <maximumf>, %454, %cst_103 [1] : vector<64x128xf32> to vector<64xf32>
    %456 = vector.shape_cast %455 : vector<64xf32> to vector<64x1xf32>
    %457 = vector.broadcast %456 : vector<64x1xf32> to vector<64x128xf32>
    %458 = arith.subf %454, %457 : vector<64x128xf32>
    %459 = math.exp %458 : vector<64x128xf32>
    %cst_104 = arith.constant dense<0.000000e+00> : vector<64xf32>
    %460 = vector.multi_reduction <add>, %459, %cst_104 [1] : vector<64x128xf32> to vector<64xf32>
    %461 = vector.shape_cast %460 : vector<64xf32> to vector<64x1xf32>
    %462 = vector.broadcast %461 : vector<64x1xf32> to vector<64x128xf32>
    %463 = arith.divf %459, %462 : vector<64x128xf32>
    %464 = vector.shape_cast %463 : vector<64x128xf32> to vector<8x8x128xf32>
    %c0_105 = arith.constant 0 : index
    %c0_106 = arith.constant 0 : index
    %c0_107 = arith.constant 0 : index
    %465 = vector.load %arg8[%c0_105, %c0_106, %c0_107] : memref<8x8x128xf32, #tpu.memory_space<vmem>>, vector<8x8x128xf32>
    tpu.vector_store %arg8[%c0_105, %c0_106, %c0_107], %464 {strides = array<i32>} : memref<8x8x128xf32, #tpu.memory_space<vmem>>, vector<8x8x128xf32>,
    return
  }
}

</mosaic_0001>

<bundles_post_ra>
// kernel: tpu_custom_call.1
= control target key start
LH: loop header
LB: loop body
LE: loop exit
PB: predicated region body
PF: predicated region fallthrough
CT: control target
= control target key end

     0   :  { %v3963_v2 = vmov 0   ;;  %s4774_s0 = inlined_call_operand.vmem [shape: s32[64,1], index: 0, kind: input, shape index: {}]   ;;  %s4775_s1 = inlined_call_operand.vmem [shape: f32[8,64], index: 1, kind: input, shape index: {}]   ;;  %s4776_s2 = inlined_call_operand.vmem [shape: f32[128,32], index: 2, kind: input, shape index: {}]   ;;  %s4777_s3 = inlined_call_operand.vmem [shape: f32[72,32], index: 3, kind: input, shape index: {}]   ;;  %s4778_s4 = inlined_call_operand.vmem [shape: f32[80,96], index: 4, kind: input, shape index: {}]   ;;  %s4779_s5 = inlined_call_operand.vmem [shape: f32[80,96], index: 5, kind: input, shape index: {}]   ;;  %s4780_s6 = inlined_call_operand.vmem [shape: f32[40,32], index: 6, kind: input, shape index: {}]   ;;  %s4781_s7 = inlined_call_operand.vmem [shape: f32[40,128], index: 7, kind: input, shape index: {}]   ;;  %s4782_s8 = inlined_call_operand.hbm [shape: f32[8,8,128], index: 8, kind: output, shape index: {}]  }
   0x1   :  { %v151_v0 = vld [vmem:[%s4774_s0 + $0x10] sm:$0xff]  ;;  %v149_v1 = vld [vmem:[%s4774_s0] sm:$0xff]  ;;  %3779 = vset.pattern.permute.xlu1 %v3963_v2  ;;  %3778 = vset.pattern.permute.xlu0 %v3963_v2  ;;  %v222_v3 = vld [vmem:[%s4776_s2 + $0x78] sm:$0xff] }
   0x2   :  { %166 = vperm.xlu1 %3779, %v151_v0   ;;  %160 = vperm.xlu0 %3778, %v149_v1   ;;  %v152_v4 = vld [vmem:[%s4774_s0 + $0x18] sm:$0xff]  ;;  %v150_v5 = vld [vmem:[%s4774_s0 + $0x8] sm:$0xff]  ;;  %v221_v6 = vld [vmem:[%s4776_s2 + $0x70] sm:$0xff] }
   0x3   :  { %3392 = vmatprep.subr.mxu1 %v222_v3  ;;  %v220_v7 = vld [vmem:[%s4776_s2 + $0x68] sm:$0xff]  ;;  %v153_v9 = vld [vmem:[%s4774_s0 + $0x20] sm:$0xff] }
   0x4   :  { %3393 = vmatpush3.msra.mxu1 %v222_v3  ;;  %v154_v8 = vld [vmem:[%s4774_s0 + $0x28] sm:$0xff]  ;;  %v219_v10 = vld [vmem:[%s4776_s2 + $0x60] sm:$0xff] }
   0x5   :  { %3394 = vmatprep.subr.mxu1 %v221_v6 }
   0x6   :  { %169 = vperm.xlu1 %3779, %v152_v4   ;;  %163 = vperm.xlu0 %3778, %v150_v5  }
   0x7   :  { %3395 = vmatpush3.msra.mxu1 %v221_v6 }
   0x8   :  { %3396 = vmatprep.subr.mxu1 %v220_v7 }
   0x9   :  { %13 = vsyncpa [#allocation4], 0  ;;  %3397 = vmatpush3.msra.mxu1 %v220_v7  ;;  %v218_v11 = vld [vmem:[%s4776_s2 + $0x58] sm:$0xff]  ;;  %v155_v13 = vld [vmem:[%s4774_s0 + $0x30] sm:$0xff]  ;;  %v3964_v17 = vmov 0.0   ;;  %vm74_vm0 = vcmask 523264   ;;  %v157_v38 = vlaneseq }
   0xa   :  { %175 = vperm.xlu1 %3779, %v154_v8   ;;  %172 = vperm.xlu0 %3778, %v153_v9   ;;  %v156_v12 = vld [vmem:[%s4774_s0 + $0x38] sm:$0xff]  ;;  %v217_v14 = vld [vmem:[%s4776_s2 + $0x50] sm:$0xff]  ;;  %v216_v15 = vld [vmem:[%s4776_s2 + $0x48] sm:$0xff]  ;;  %vm3965_vm1 = vmmov 0   ;;  %v3966_v42 = vmov 1.0   ;;  %vm332_vm10 = vcmask 261120  }
   0xb   :  { %3398 = vmatprep.subr.mxu1 %v219_v10  ;;  %v37_v16 = vld [vmem:[%s4777_s3 + $0x38] sm:$0xff]  ;;  %3373 = vmatprep.subr.mxu0 %v3964_v17  ;;  %v36_v18 = vld [vmem:[%s4777_s3 + $0x30] sm:$0xff]  ;;  %v215_v19 = vld [vmem:[%s4776_s2 + $0x40] sm:$0xff]  ;;  %v158_v39 = vand.u32 127, %v157_v38  ;;  %s3967_s20 = smov 64   ;;  %s3968_s23 = smov 32  }
   0xc   :  { %3399 = vmatpush3.msra.mxu1 %v219_v10  ;;  %3374 = vmatpush3.msra.mxu0 %v37_v16  ;;  %v35_v20 = vld [vmem:[%s4777_s3 + $0x28] sm:$0xff]  ;;  %v214_v21 = vld [vmem:[%s4776_s2 + $0x38] sm:$0xff]  ;;  %v34_v22 = vld [vmem:[%s4777_s3 + $0x20] sm:$0xff]  ;;  %s3969_s13 = smov 96  }
   0xd   :  { %3400 = vmatprep.subr.mxu1 %v218_v11  ;;  %3375 = vmatprep.subr.mxu0 %v3964_v17  ;;  %v213_v23 = vld [vmem:[%s4776_s2 + $0x30] sm:$0xff]  ;;  %v33_v24 = vld [vmem:[%s4777_s3 + $0x18] sm:$0xff]  ;;  %v212_v25 = vld [vmem:[%s4776_s2 + $0x28] sm:$0xff] }
   0xe   :  { %181 = vperm.xlu1 %3779, %v156_v12   ;;  %178 = vperm.xlu0 %3778, %v155_v13   ;;  %v32_v26 = vld [vmem:[%s4777_s3 + $0x10] sm:$0xff]  ;;  %v211_v27 = vld [vmem:[%s4776_s2 + $0x20] sm:$0xff]  ;;  %v31_v28 = vld [vmem:[%s4777_s3 + $0x8] sm:$0xff] }
   0xf   :  { %3401 = vmatpush3.msra.mxu1 %v218_v11  ;;  %3376 = vmatpush3.msra.mxu0 %v36_v18  ;;  %v210_v29 = vld [vmem:[%s4776_s2 + $0x18] sm:$0xff]  ;;  %v30_v30 = vld [vmem:[%s4777_s3] sm:$0xff]  ;;  %v209_v31 = vld [vmem:[%s4776_s2 + $0x10] sm:$0xff] }
  0x10   :  { %3402 = vmatprep.subr.mxu1 %v217_v14  ;;  %3377 = vmatprep.subr.mxu0 %v3964_v17  ;;  %v69_v32 = vld [vmem:[%s4775_s1] sm:$0xff]  ;;  %v208_v33 = vld [vmem:[%s4776_s2 + $0x8] sm:$0xff]  ;;  %v42_v34 = vld [vmem:[%s4778_s4 + $0x18] sm:$0xff] }
  0x11   :  { %3403 = vmatpush3.msra.mxu1 %v217_v14  ;;  %3378 = vmatpush3.msra.mxu0 %v35_v20  ;;  %v207_v35 = vld [vmem:[%s4776_s2] sm:$0xff]  ;;  %v41_v36 = vld [vmem:[%s4778_s4 + $0x10] sm:$0xff]  ;;  %v40_v37 = vld [vmem:[%s4778_s4 + $0x8] sm:$0xff] }
  0x12   :  { %3404 = vmatprep.subr.mxu1 %v216_v15  ;;  %3379 = vmatprep.subr.mxu0 %v3964_v17  ;;  %v39_v49 = vld [vmem:[%s4778_s4] sm:$0xff]  ;;  %v4148_v54 = vld [vmem:[%s4778_s4 + $0x38] sm:$0xff]  ;;  %v4155_v56 = vld [vmem:[%s4778_s4 + $0x30] sm:$0xff] }
  0x13   :  { %3405 = vmatpush3.msra.mxu1 %v216_v15  ;;  %3380 = vmatpush3.msra.mxu0 %v34_v22  ;;  %v4162_v58 = vld [vmem:[%s4778_s4 + $0x28] sm:$0xff]  ;;  %v4171_v60 = vld [vmem:[%s4778_s4 + $0x20] sm:$0xff] }
  0x14   :  { %3406 = vmatprep.subr.mxu1 %v215_v19  ;;  %3381 = vmatprep.subr.mxu0 %v3964_v17  ;;  %v3115_v0 = vld [vmem:[%s4778_s4 + $0x40] ss:$0 sm:$0xff]  ;;  %v4204_v15 = vld [vmem:[%s4778_s4 + $0x48] ss:$0 sm:$0xff] }
  0x15   :  { %3407 = vmatpush3.msra.mxu1 %v215_v19  ;;  %3382 = vmatpush3.msra.mxu0 %v33_v24  ;;  %v4240_v38 = vld [vmem:[%s4779_s5 + $0x28] sm:$0xff] }
  0x16   :  { %3408 = vmatprep.subr.mxu1 %v214_v21  ;;  %3383 = vmatprep.subr.mxu0 %v3964_v17 }
  0x17   :  { %3409 = vmatpush3.msra.mxu1 %v214_v21  ;;  %3384 = vmatpush3.msra.mxu0 %v32_v26  ;;  %v3097_v26 = vld [vmem:[%s4777_s3 + $0x40] ss:$0 sm:$0xff] }
  0x18   :  { %3410 = vmatprep.subr.mxu1 %v213_v23  ;;  %3385 = vmatprep.subr.mxu0 %v3964_v17 }
  0x19   :  { %3411 = vmatpush3.msra.mxu1 %v213_v23  ;;  %3386 = vmatpush3.msra.mxu0 %v31_v28 }
  0x1a   :  { %3412 = vmatprep.subr.mxu1 %v212_v25  ;;  %3387 = vmatprep.subr.mxu0 %v3964_v17 }
  0x1b   :  { %3413 = vmatpush3.msra.mxu1 %v212_v25  ;;  %3388 = vmatpush3.msra.mxu0 %v30_v30 }
  0x1c   :  { %3414 = vmatprep.subr.mxu1 %v211_v27  ;;  %3389 = vmatprep.mubr.msk.f32.mxu0 %vm3965_vm1, %v3964_v17 }
  0x1d   :  { %3415 = vmatpush3.msra.mxu1 %v211_v27  ;;  %3390 = vmatmul.mubr.msk.f32.vlgmr.msra.gmra.mxu0 %vm74_vm0, %v69_v32 }
  0x1e   :  { %3416 = vmatprep.subr.mxu1 %v210_v29  ;;  %3436 = vmatprep.subr.mxu0 %v42_v34 }
  0x1f   :  { %3417 = vmatpush3.msra.mxu1 %v210_v29  ;;  %3437 = vmatpush3.msra.mxu0 %v42_v34  ;;  %v4218_v34 = vld [vmem:[%s4779_s5 + $0x38] sm:$0xff] }
  0x20   :  { %3418 = vmatprep.subr.mxu1 %v209_v31  ;;  %3438 = vmatprep.subr.mxu0 %v41_v36 }
  0x21   :  { %3419 = vmatpush3.msra.mxu1 %v209_v31  ;;  %3439 = vmatpush3.msra.mxu0 %v41_v36  ;;  %v4229_v36 = vld [vmem:[%s4779_s5 + $0x18] sm:$0xff] }
  0x22   :  { %3420 = vmatprep.subr.mxu1 %v208_v33  ;;  %3440 = vmatprep.subr.mxu0 %v40_v37 }
  0x23   :  { %3421 = vmatpush3.msra.mxu1 %v208_v33  ;;  %3441 = vmatpush3.msra.mxu0 %v40_v37  ;;  %v4234_v37 = vld [vmem:[%s4779_s5 + $0x10] sm:$0xff] }
  0x24   :  { %3422 = vmatprep.subr.mxu1 %v207_v35  ;;  %3442 = vmatprep.subr.mxu0 %v39_v49 }
  0x25   :  { %3423 = vmatpush3.msra.mxu1 %v207_v35  ;;  %3443 = vmatpush3.msra.mxu0 %v39_v49  ;;  %v4223_v35 = vld [vmem:[%s4779_s5 + $0x30] sm:$0xff] }
  0x26   :  { %3478 = vmatprep.subr.mxu1 %v3964_v17  ;;  %3456 = vmatprep.subr.mxu0 %v3964_v17 }
  0x7d   :  { %v167_v40 = vpop.permute.xlu1 %166  ;;  %v161_v41 = vpop.permute.xlu0 %160 }
  0x7e   :  { %vm183_vm2 = vcmp.eq.s32.totalorder %v161_v41, %v158_v39  ;;  %vm185_vm3 = vcmp.eq.s32.totalorder %v167_v40, %v158_v39  ;;  %v4254_v40 = vld [vmem:[%s4779_s5 + $0x20] sm:$0xff] }
  0x7f   :  { %3424 = vmatprep.mubr.msk.f32.mxu1 %vm183_vm2, %v3966_v42 }
  0x81   :  { %v170_v43 = vpop.permute.xlu1 %169  ;;  %v164_v44 = vpop.permute.xlu0 %163 }
  0x82   :  { %vm184_vm4 = vcmp.eq.s32.totalorder %v164_v44, %v158_v39  ;;  %vm186_vm5 = vcmp.eq.s32.totalorder %v170_v43, %v158_v39 }
  0x83   :  { %3425 = vmatmul.mubr.msk.f32.vlgmr.msra.gmra.mxu1 %vm184_vm4, %v3966_v42 }
  0x84   :  { %3427 = vmatprep.mubr.msk.f32.mxu1 %vm185_vm3, %v3966_v42  ;;  %3479 = vmatpush3.msra.mxu1 %v4218_v34 }
  0x85   :  { %v176_v45 = vpop.permute.xlu1 %175  ;;  %v173_v46 = vpop.permute.xlu0 %172  ;;  %3480 = vmatprep.subr.mxu1 %v3964_v17 }
  0x86   :  { %vm187_vm6 = vcmp.eq.s32.totalorder %v173_v46, %v158_v39  ;;  %vm188_vm7 = vcmp.eq.s32.totalorder %v176_v45, %v158_v39  ;;  %3481 = vmatpush3.msra.mxu1 %v4223_v35 }
  0x87   :  { %3428 = vmatmul.mubr.msk.f32.gmra.mxu1 %vm186_vm5, %v3966_v42  ;;  %3482 = vmatprep.subr.mxu1 %v3964_v17 }
  0x88   :  { %3430 = vmatprep.mubr.msk.f32.mxu1 %vm187_vm6, %v3966_v42  ;;  %3483 = vmatpush3.msra.mxu1 %v4240_v38 }
  0x89   :  { %v179_v47 = vpop.permute.xlu0 %178  ;;  %v182_v48 = vpop.permute.xlu1 %181  ;;  %3484 = vmatprep.subr.mxu1 %v3964_v17 }
  0x8a   :  { %vm189_vm8 = vcmp.eq.s32.totalorder %v179_v47, %v158_v39  ;;  %vm190_vm9 = vcmp.eq.s32.totalorder %v182_v48, %v158_v39  ;;  %v4248_v39 = vld [vmem:[%s4779_s5 + $0x8] sm:$0xff]  ;;  %3485 = vmatpush3.msra.mxu1 %v4254_v40 }
  0x8b   :  { %3431 = vmatmul.mubr.msk.f32.gmra.mxu1 %vm188_vm7, %v3966_v42  ;;  %3500 = vmatprep.subr.mxu1 %v3964_v17 }
  0x8c   :  { %3433 = vmatprep.mubr.msk.f32.mxu1 %vm189_vm8, %v3966_v42 }
  0x8f   :  { %3434 = vmatmul.mubr.msk.f32.gmra.mxu1 %vm190_vm9, %v3966_v42  ;;  %v4268_v42 = vld [vmem:[%s4779_s5] sm:$0xff] }
  0x90   :  { %3486 = vmatprep.mubr.msk.f32.mxu1 %vm3965_vm1, %v3964_v17 }
  0xdd   :  { %v4143_v50 = vpop.f32.mrf.mxu0 }
  0xde   :  { %v145_v27 = vadd.f32 %v3097_v26, %v4143_v50 }
  0xdf   :  { %v3391_v51 = vpop.f32.mrf.mxu0 }
 0x143   :  { %v3426_v52 = vpop.f32.mrf.mxu1 }
 0x145   :  { %v289_v53 = vpop.f32.mrf.mxu1 }
 0x146   :  { %3444 = vmatprep.mubr.msk.f32.mxu0 %vm332_vm10, %v289_v53 }
 0x147   :  { %v3429_v55 = vpop.f32.mrf.mxu1  ;;  %3445 = vmatmul.mubr.msk.f32.vlgmr.msra.gmra.mxu0 %vm332_vm10, %v3426_v52  ;;  %v4302_v52 = vld [vmem:[%s4779_s5 + $0x48] ss:$0 sm:$0xff] }
 0x148   :  { %3457 = vmatpush3.msra.mxu0 %v4148_v54 }
 0x149   :  { %v299_v57 = vpop.f32.mrf.mxu1  ;;  %3458 = vmatprep.subr.mxu0 %v3964_v17 }
 0x14a   :  { %3447 = vmatprep.mubr.msk.f32.mxu0 %vm332_vm10, %v299_v57  ;;  %3459 = vmatpush3.msra.mxu0 %v4155_v56 }
 0x14b   :  { %v3432_v59 = vpop.f32.mrf.mxu1  ;;  %3448 = vmatmul.mubr.msk.f32.gmra.mxu0 %vm332_vm10, %v3429_v55  ;;  %3460 = vmatprep.subr.mxu0 %v3964_v17 }
 0x14c   :  { %3461 = vmatpush3.msra.mxu0 %v4162_v58 }
 0x14d   :  { %v309_v61 = vpop.f32.mrf.mxu1  ;;  %3462 = vmatprep.subr.mxu0 %v3964_v17 }
 0x14e   :  { %3450 = vmatprep.mubr.msk.f32.mxu0 %vm332_vm10, %v309_v61  ;;  %3463 = vmatpush3.msra.mxu0 %v4171_v60 }
 0x14f   :  { %v3435_v62 = vpop.f32.mrf.mxu1  ;;  %3451 = vmatmul.mubr.msk.f32.gmra.mxu0 %vm332_vm10, %v3432_v59  ;;  %3467 = vmatprep.subr.mxu0 %v3964_v17 }
 0x151   :  { %v319_v63 = vpop.f32.mrf.mxu1 }
 0x152   :  { %3453 = vmatprep.mubr.msk.f32.mxu0 %vm332_vm10, %v319_v63 }
 0x153   :  { %3454 = vmatmul.mubr.msk.f32.gmra.mxu0 %vm332_vm10, %v3435_v62  ;;  %v4309_v62 = vld [vmem:[%s4779_s5 + $0x40] ss:$0 sm:$0xff] }
 0x154   :  { %3464 = vmatprep.mubr.msk.f32.mxu0 %vm3965_vm1, %v3964_v17 }
 0x157   :  { %3465 = vmatmul.mubr.f32.vlgmr.msra.gmra.mxu0 %v3964_v17 }
 0x158   :  { %3475 = vmatprep.mubr.msk.f32.mxu0 %vm3965_vm1, %v3964_v17  ;;  %3468 = vmatpush3.msra.mxu0 %v4229_v36 }
 0x159   :  { %3469 = vmatprep.subr.mxu0 %v3964_v17 }
 0x15a   :  { %3470 = vmatpush3.msra.mxu0 %v4234_v37 }
 0x15b   :  { %3471 = vmatprep.subr.mxu0 %v3964_v17 }
 0x15c   :  { %3472 = vmatpush3.msra.mxu0 %v4248_v39 }
 0x15d   :  { %3473 = vmatprep.subr.mxu0 %v3964_v17 }
 0x15e   :  { %3474 = vmatpush3.msra.mxu0 %v4268_v42 }
 0x15f   :  { %3489 = vmatprep.subr.mxu0 %v3964_v17 }
 0x207   :  { %v3446_v1 = vpop.f32.mrf.mxu0 }
 0x208   :  { %v4189_v2 = vadd.f32 %v3446_v1, %v3115_v0 }
 0x209   :  { %v423_v3 = vpop.f32.mrf.mxu0 }
 0x20a   :  { %v424_v21 = vadd.f32 %v3115_v0, %v423_v3 }
 0x20b   :  { %v3449_v4 = vpop.f32.mrf.mxu0 }
 0x20c   :  { %v4191_v5 = vadd.f32 %v3449_v4, %v3115_v0 }
 0x20d   :  { %v433_v6 = vpop.f32.mrf.mxu0 }
 0x20e   :  { %v4193_v7 = vadd.f32 %v3115_v0, %v433_v6 }
 0x20f   :  { %v3452_v8 = vpop.f32.mrf.mxu0 }
 0x210   :  { %v4195_v9 = vadd.f32 %v3452_v8, %v3115_v0 }
 0x211   :  { %v443_v10 = vpop.f32.mrf.mxu0 }
 0x212   :  { %v4197_v11 = vadd.f32 %v3115_v0, %v443_v10 }
 0x213   :  { %v3455_v12 = vpop.f32.mrf.mxu0 }
 0x214   :  { %v4199_v13 = vadd.f32 %v3455_v12, %v3115_v0 }
 0x215   :  { %v453_v14 = vpop.f32.mrf.mxu0 }
 0x216   :  { %v4206_v16 = vadd.f32 %v3115_v0, %v453_v14 }
 0x217   :  { %v535_v18 = vpop.f32.mrf.mxu0 }
 0x218   :  { %v536_v19 = vadd.f32 %v4204_v15, %v535_v18 }
 0x219   :  { %v3466_v20 = vpop.f32.mrf.mxu0 }
 0x21a   :  { %547 = vrot.lane.b32.xlu0 %v536_v19, %s3967_s20  ;;  %v539_v22 = vadd.f32 %v536_v19, %v424_v21 }
 0x21c   :  { %v3125_v23 = vmul.f32 -1.442695, %v539_v22 }
 0x21e   :  { %3780 = vpow2.f32 %v3125_v23 }
 0x22b   :  { %v3781_v24 = vpop.eup %3780 }
 0x22c   :  { %v543_v25 = vadd.f32 1.0, %v3781_v24 }
 0x22e   :  { %3782 = vrcp.f32 %v543_v25 }
 0x22f   :  { %3784 = vtanh.f32 %v145_v27 }
 0x23b   :  { %v3783_v28 = vpop.eup %3782 }
 0x23c   :  { %v3785_v31 = vpop.eup %3784  ;;  %v557_v43 = vsub.f32 1.0, %v3783_v28  ;;  %v563_v45 = vmul.f32 0.0, %v3783_v28 }
 0x28c   :  { %v548_v29 = vpop.permute.xlu0 %547 }
 0x28d   :  { %v550_v30 = vmul.f32 %v3783_v28, %v548_v29 }
 0x28f   :  { %552 = vrot.lane.b32.xlu1 %v550_v30, %s3967_s20 }
 0x293   :  { %566 = vrot.lane.b32.xlu1 %v3785_v31, %s3968_s23 }
 0x301   :  { %v553_v32 = vpop.permute.xlu1 %552 }
 0x302   :  { %v555_v33 = vadd.f32 %v553_v32, %v424_v21 }
 0x304   :  { %3786 = vtanh.f32 %v555_v33 }
 0x305   :  { %v4272_v48 = vpop.permute.xlu1 %566 }
 0x311   :  { %v3787_v41 = vpop.eup %3786 }
 0x312   :  { %559 = vrot.lane.b32.xlu0 %v3787_v41, %s3969_s13 }
 0x384   :  { %v560_v44 = vpop.permute.xlu0 %559 }
 0x385   :  { %v562_v46 = vmul.f32 %v560_v44, %v557_v43 }
 0x387   :  { %v564_v47 = vadd.f32 %v563_v45, %v562_v46 }
 0x389   :  { %654 = vrot.lane.b32.xlu0 %v564_v47, %s3969_s13  ;;  %v569_v49 = vmul.f32 %v4272_v48, %v564_v47 }
 0x38b   :  { %575 = vrot.lane.b32.xlu1 %v569_v49, %s3969_s13 }
 0x3fb   :  { %v655_v50 = vpop.permute.xlu0 %654 }
 0x3fc   :  { %3487 = vmatmul.mubr.msk.f32.vlgmr.msra.gmra.mxu1 %vm332_vm10, %v655_v50 }
 0x3fd   :  { %v576_v51 = vpop.permute.xlu1 %575  ;;  %3501 = vmatpush3.msra.mxu1 %v4229_v36  ;;  %3508 = vmatprep.mubr.msk.f32.mxu1 %vm3965_vm1, %v3964_v17 }
 0x3fe   :  { %3476 = vmatmul.mubr.msk.f32.vlgmr.msra.gmra.mxu0 %vm332_vm10, %v576_v51  ;;  %3502 = vmatprep.subr.mxu1 %v3964_v17 }
 0x3ff   :  { %3490 = vmatpush3.msra.mxu0 %v4148_v54  ;;  %3497 = vmatprep.mubr.msk.f32.mxu0 %vm3965_vm1, %v3964_v17 }
 0x400   :  { %3491 = vmatprep.subr.mxu0 %v3964_v17  ;;  %3503 = vmatpush3.msra.mxu1 %v4234_v37 }
 0x401   :  { %3492 = vmatpush3.msra.mxu0 %v4155_v56  ;;  %3504 = vmatprep.subr.mxu1 %v3964_v17 }
 0x402   :  { %3493 = vmatprep.subr.mxu0 %v3964_v17  ;;  %3505 = vmatpush3.msra.mxu1 %v4248_v39 }
 0x403   :  { %3494 = vmatpush3.msra.mxu0 %v4162_v58  ;;  %3506 = vmatprep.subr.mxu1 %v3964_v17 }
 0x404   :  { %3495 = vmatprep.subr.mxu0 %v3964_v17  ;;  %3507 = vmatpush3.msra.mxu1 %v4268_v42 }
 0x405   :  { %3496 = vmatpush3.msra.mxu0 %v4171_v60  ;;  %3522 = vmatprep.subr.mxu1 %v3964_v17 }
 0x406   :  { %3511 = vmatprep.subr.mxu0 %v3964_v17 }
 0x4bc   :  { %v724_v53 = vpop.f32.mrf.mxu1 }
 0x4bd   :  { %v725_v55 = vadd.f32 %v4302_v52, %v724_v53 }
 0x4be   :  { %v645_v57 = vpop.f32.mrf.mxu0  ;;  %v3488_v59 = vpop.f32.mrf.mxu1 }
 0x4bf   :  { %736 = vrot.lane.b32.xlu0 %v725_v55, %s3967_s20  ;;  %v646_v63 = vadd.f32 %v4309_v62, %v645_v57 }
 0x4c0   :  { %v3477_v61 = vpop.f32.mrf.mxu0 }
 0x4c1   :  { %v728_v0 = vadd.f32 %v725_v55, %v646_v63 }
 0x4c3   :  { %v3130_v1 = vmul.f32 -1.442695, %v728_v0 }
 0x4c5   :  { %3788 = vpow2.f32 %v3130_v1 }
 0x4d2   :  { %v3789_v3 = vpop.eup %3788 }
 0x4d3   :  { %v732_v4 = vadd.f32 1.0, %v3789_v3 }
 0x4d5   :  { %3790 = vrcp.f32 %v732_v4 }
 0x4e2   :  { %v3791_v6 = vpop.eup %3790 }
 0x4e3   :  { %v746_v19 = vsub.f32 1.0, %v3791_v6  ;;  %v752_v21 = vmul.f32 %v3791_v6, %v564_v47 }
 0x531   :  { %v737_v8 = vpop.permute.xlu0 %736 }
 0x532   :  { %v739_v10 = vmul.f32 %v3791_v6, %v737_v8 }
 0x534   :  { %741 = vrot.lane.b32.xlu1 %v739_v10, %s3967_s20 }
 0x5a6   :  { %v742_v12 = vpop.permute.xlu1 %741 }
 0x5a7   :  { %v744_v14 = vadd.f32 %v742_v12, %v646_v63 }
 0x5a9   :  { %3792 = vtanh.f32 %v744_v14 }
 0x5b6   :  { %v3793_v18 = vpop.eup %3792 }
 0x5b7   :  { %748 = vrot.lane.b32.xlu0 %v3793_v18, %s3969_s13 }
 0x629   :  { %v749_v20 = vpop.permute.xlu0 %748 }
 0x62a   :  { %v751_v22 = vmul.f32 %v749_v20, %v746_v19 }
 0x62c   :  { %v753_v23 = vadd.f32 %v752_v21, %v751_v22 }
 0x62e   :  { %755 = vrot.lane.b32.xlu1 %v753_v23, %s3969_s13 }
 0x6a0   :  { %v756_v24 = vpop.permute.xlu1 %755 }
 0x6a1   :  { %758 = vst.msk [vmem:[#allocation2] sm:$0xff] %vm332_vm10, %v756_v24  ;;  %3498 = vmatmul.mubr.msk.f32.vlgmr.msra.gmra.mxu0 %vm332_vm10, %v756_v24 }
 0x6a2   :  { %3512 = vmatpush3.msra.mxu0 %v4218_v34  ;;  %3519 = vmatprep.mubr.msk.f32.mxu0 %vm3965_vm1, %v3964_v17 }
 0x6a3   :  { %3513 = vmatprep.subr.mxu0 %v3964_v17 }
 0x6a4   :  { %3514 = vmatpush3.msra.mxu0 %v4223_v35 }
 0x6a5   :  { %3515 = vmatprep.subr.mxu0 %v3964_v17 }
 0x6a6   :  { %3516 = vmatpush3.msra.mxu0 %v4240_v38 }
 0x6a7   :  { %3517 = vmatprep.subr.mxu0 %v3964_v17 }
 0x6a8   :  { %3518 = vmatpush3.msra.mxu0 %v4254_v40 }
 0x6a9   :  { %3533 = vmatprep.subr.mxu0 %v3964_v17 }
 0x761   :  { %v827_v25 = vpop.f32.mrf.mxu0 }
 0x762   :  { %v828_v26 = vadd.f32 %v4204_v15, %v827_v25 }
 0x763   :  { %v3499_v27 = vpop.f32.mrf.mxu0 }
 0x764   :  { %839 = vrot.lane.b32.xlu0 %v828_v26, %s3967_s20  ;;  %v831_v28 = vadd.f32 %v828_v26, %v4189_v2 }
 0x766   :  { %v3132_v29 = vmul.f32 -1.442695, %v831_v28 }
 0x768   :  { %3794 = vpow2.f32 %v3132_v29 }
 0x775   :  { %v3795_v30 = vpop.eup %3794 }
 0x776   :  { %v835_v31 = vadd.f32 1.0, %v3795_v30 }
 0x778   :  { %3796 = vrcp.f32 %v835_v31 }
 0x785   :  { %v3797_v32 = vpop.eup %3796 }
 0x786   :  { %v849_v46 = vsub.f32 1.0, %v3797_v32  ;;  %v855_v49 = vmul.f32 %v3797_v32, %v753_v23 }
 0x7d6   :  { %v840_v33 = vpop.permute.xlu0 %839 }
 0x7d7   :  { %v842_v41 = vmul.f32 %v3797_v32, %v840_v33 }
 0x7d9   :  { %844 = vrot.lane.b32.xlu1 %v842_v41, %s3967_s20 }
 0x84b   :  { %v845_v43 = vpop.permute.xlu1 %844 }
 0x84c   :  { %v847_v44 = vadd.f32 %v845_v43, %v4189_v2 }
 0x84e   :  { %3798 = vtanh.f32 %v847_v44 }
 0x85b   :  { %v3799_v45 = vpop.eup %3798 }
 0x85c   :  { %851 = vrot.lane.b32.xlu0 %v3799_v45, %s3969_s13 }
 0x8ce   :  { %v852_v47 = vpop.permute.xlu0 %851 }
 0x8cf   :  { %v854_v50 = vmul.f32 %v852_v47, %v849_v46 }
 0x8d1   :  { %v856_v51 = vadd.f32 %v855_v49, %v854_v50 }
 0x8d3   :  { %934 = vrot.lane.b32.xlu1 %v856_v51, %s3969_s13  ;;  %v857_v53 = vmul.f32 %v856_v51, %v4272_v48 }
 0x8d5   :  { %859 = vrot.lane.b32.xlu0 %v857_v53, %s3969_s13 }
 0x945   :  { %v935_v55 = vpop.permute.xlu1 %934 }
 0x946   :  { %3520 = vmatmul.mubr.msk.f32.vlgmr.msra.gmra.mxu0 %vm332_vm10, %v935_v55 }
 0x947   :  { %v860_v57 = vpop.permute.xlu0 %859  ;;  %3534 = vmatpush3.msra.mxu0 %v4229_v36  ;;  %3541 = vmatprep.mubr.msk.f32.mxu0 %vm3965_vm1, %v3964_v17 }
 0x948   :  { %3509 = vmatmul.mubr.msk.f32.vlgmr.msra.gmra.mxu1 %vm332_vm10, %v860_v57  ;;  %3535 = vmatprep.subr.mxu0 %v3964_v17 }
 0x949   :  { %3523 = vmatpush3.msra.mxu1 %v4148_v54  ;;  %3530 = vmatprep.mubr.msk.f32.mxu1 %vm3965_vm1, %v3964_v17 }
 0x94a   :  { %3524 = vmatprep.subr.mxu1 %v3964_v17  ;;  %3536 = vmatpush3.msra.mxu0 %v4234_v37 }
 0x94b   :  { %3525 = vmatpush3.msra.mxu1 %v4155_v56  ;;  %3537 = vmatprep.subr.mxu0 %v3964_v17 }
 0x94c   :  { %3526 = vmatprep.subr.mxu1 %v3964_v17  ;;  %3538 = vmatpush3.msra.mxu0 %v4248_v39 }
 0x94d   :  { %3527 = vmatpush3.msra.mxu1 %v4162_v58  ;;  %3539 = vmatprep.subr.mxu0 %v3964_v17 }
 0x94e   :  { %3528 = vmatprep.subr.mxu1 %v3964_v17  ;;  %3540 = vmatpush3.msra.mxu0 %v4268_v42 }
 0x94f   :  { %3529 = vmatpush3.msra.mxu1 %v4171_v60  ;;  %3555 = vmatprep.subr.mxu0 %v3964_v17 }
 0x950   :  { %3544 = vmatprep.subr.mxu1 %v3964_v17 }
 0xa06   :  { %v1004_v2 = vpop.f32.mrf.mxu0 }
 0xa07   :  { %v1005_v59 = vadd.f32 %v4302_v52, %v1004_v2 }
 0xa08   :  { %v929_v61 = vpop.f32.mrf.mxu1  ;;  %v3521_v63 = vpop.f32.mrf.mxu0 }
 0xa09   :  { %1016 = vrot.lane.b32.xlu1 %v1005_v59, %s3967_s20  ;;  %v930_v1 = vadd.f32 %v4309_v62, %v929_v61 }
 0xa0a   :  { %v3510_v0 = vpop.f32.mrf.mxu1 }
 0xa0b   :  { %v1008_v3 = vadd.f32 %v1005_v59, %v930_v1 }
 0xa0d   :  { %v3135_v4 = vmul.f32 -1.442695, %v1008_v3 }
 0xa0f   :  { %3800 = vpow2.f32 %v3135_v4 }
 0xa1c   :  { %v3801_v6 = vpop.eup %3800 }
 0xa1d   :  { %v1012_v8 = vadd.f32 1.0, %v3801_v6 }
 0xa1f   :  { %3802 = vrcp.f32 %v1012_v8 }
 0xa2c   :  { %v3803_v10 = vpop.eup %3802 }
 0xa2d   :  { %v1026_v21 = vsub.f32 1.0, %v3803_v10  ;;  %v1032_v23 = vmul.f32 %v3803_v10, %v856_v51 }
 0xa7b   :  { %v1017_v12 = vpop.permute.xlu1 %1016 }
 0xa7c   :  { %v1019_v14 = vmul.f32 %v3803_v10, %v1017_v12 }
 0xa7e   :  { %1021 = vrot.lane.b32.xlu0 %v1019_v14, %s3967_s20 }
 0xaf0   :  { %v1022_v18 = vpop.permute.xlu0 %1021 }
 0xaf1   :  { %v1024_v19 = vadd.f32 %v1022_v18, %v930_v1 }
 0xaf3   :  { %3804 = vtanh.f32 %v1024_v19 }
 0xb00   :  { %v3805_v20 = vpop.eup %3804 }
 0xb01   :  { %1028 = vrot.lane.b32.xlu1 %v3805_v20, %s3969_s13 }
 0xb73   :  { %v1029_v22 = vpop.permute.xlu1 %1028 }
 0xb74   :  { %v1031_v24 = vmul.f32 %v1029_v22, %v1026_v21 }
 0xb76   :  { %v1033_v25 = vadd.f32 %v1032_v23, %v1031_v24 }
 0xb78   :  { %1035 = vrot.lane.b32.xlu0 %v1033_v25, %s3969_s13 }
 0xbea   :  { %v1036_v26 = vpop.permute.xlu0 %1035 }
 0xbeb   :  { %1038 = vst.msk [vmem:[#allocation2 + $0x8] sm:$0xff] %vm332_vm10, %v1036_v26  ;;  %3531 = vmatmul.mubr.msk.f32.vlgmr.msra.gmra.mxu1 %vm332_vm10, %v1036_v26 }
 0xbec   :  { %3545 = vmatpush3.msra.mxu1 %v4218_v34  ;;  %3552 = vmatprep.mubr.msk.f32.mxu1 %vm3965_vm1, %v3964_v17 }
 0xbed   :  { %3546 = vmatprep.subr.mxu1 %v3964_v17 }
 0xbee   :  { %3547 = vmatpush3.msra.mxu1 %v4223_v35 }
 0xbef   :  { %3548 = vmatprep.subr.mxu1 %v3964_v17 }
 0xbf0   :  { %3549 = vmatpush3.msra.mxu1 %v4240_v38 }
 0xbf1   :  { %3550 = vmatprep.subr.mxu1 %v3964_v17 }
 0xbf2   :  { %3551 = vmatpush3.msra.mxu1 %v4254_v40 }
 0xbf3   :  { %3566 = vmatprep.subr.mxu1 %v3964_v17 }
 0xcab   :  { %v1107_v27 = vpop.f32.mrf.mxu1 }
 0xcac   :  { %v1108_v28 = vadd.f32 %v4204_v15, %v1107_v27 }
 0xcad   :  { %v3532_v29 = vpop.f32.mrf.mxu1 }
 0xcae   :  { %1119 = vrot.lane.b32.xlu1 %v1108_v28, %s3967_s20  ;;  %v1111_v30 = vadd.f32 %v1108_v28, %v4193_v7 }
 0xcb0   :  { %v3137_v31 = vmul.f32 -1.442695, %v1111_v30 }
 0xcb2   :  { %3806 = vpow2.f32 %v3137_v31 }
 0xcbf   :  { %v3807_v32 = vpop.eup %3806 }
 0xcc0   :  { %v1115_v33 = vadd.f32 1.0, %v3807_v32 }
 0xcc2   :  { %3808 = vrcp.f32 %v1115_v33 }
 0xccf   :  { %v3809_v41 = vpop.eup %3808 }
 0xcd0   :  { %v1129_v49 = vsub.f32 1.0, %v3809_v41  ;;  %v1135_v51 = vmul.f32 %v3809_v41, %v1033_v25 }
 0xd20   :  { %v1120_v43 = vpop.permute.xlu1 %1119 }
 0xd21   :  { %v1122_v44 = vmul.f32 %v3809_v41, %v1120_v43 }
 0xd23   :  { %1124 = vrot.lane.b32.xlu0 %v1122_v44, %s3967_s20 }
 0xd95   :  { %v1125_v45 = vpop.permute.xlu0 %1124 }
 0xd96   :  { %v1127_v46 = vadd.f32 %v1125_v45, %v4193_v7 }
 0xd98   :  { %3810 = vtanh.f32 %v1127_v46 }
 0xda5   :  { %v3811_v47 = vpop.eup %3810 }
 0xda6   :  { %1131 = vrot.lane.b32.xlu1 %v3811_v47, %s3969_s13 }
 0xe18   :  { %v1132_v50 = vpop.permute.xlu1 %1131 }
 0xe19   :  { %v1134_v53 = vmul.f32 %v1132_v50, %v1129_v49 }
 0xe1b   :  { %v1136_v55 = vadd.f32 %v1135_v51, %v1134_v53 }
 0xe1d   :  { %1214 = vrot.lane.b32.xlu0 %v1136_v55, %s3969_s13  ;;  %v1137_v57 = vmul.f32 %v1136_v55, %v4272_v48 }
 0xe1f   :  { %1139 = vrot.lane.b32.xlu1 %v1137_v57, %s3969_s13 }
 0xe8f   :  { %v1215_v2 = vpop.permute.xlu0 %1214 }
 0xe90   :  { %3553 = vmatmul.mubr.msk.f32.vlgmr.msra.gmra.mxu1 %vm332_vm10, %v1215_v2 }
 0xe91   :  { %v1140_v59 = vpop.permute.xlu1 %1139  ;;  %3567 = vmatpush3.msra.mxu1 %v4229_v36  ;;  %3574 = vmatprep.mubr.msk.f32.mxu1 %vm3965_vm1, %v3964_v17 }
 0xe92   :  { %3542 = vmatmul.mubr.msk.f32.vlgmr.msra.gmra.mxu0 %vm332_vm10, %v1140_v59  ;;  %3568 = vmatprep.subr.mxu1 %v3964_v17 }
 0xe93   :  { %3556 = vmatpush3.msra.mxu0 %v4148_v54  ;;  %3563 = vmatprep.mubr.msk.f32.mxu0 %vm3965_vm1, %v3964_v17 }
 0xe94   :  { %3557 = vmatprep.subr.mxu0 %v3964_v17  ;;  %3569 = vmatpush3.msra.mxu1 %v4234_v37 }
 0xe95   :  { %3558 = vmatpush3.msra.mxu0 %v4155_v56  ;;  %3570 = vmatprep.subr.mxu1 %v3964_v17 }
 0xe96   :  { %3559 = vmatprep.subr.mxu0 %v3964_v17  ;;  %3571 = vmatpush3.msra.mxu1 %v4248_v39 }
 0xe97   :  { %3560 = vmatpush3.msra.mxu0 %v4162_v58  ;;  %3572 = vmatprep.subr.mxu1 %v3964_v17 }
 0xe98   :  { %3561 = vmatprep.subr.mxu0 %v3964_v17  ;;  %3573 = vmatpush3.msra.mxu1 %v4268_v42 }
 0xe99   :  { %3562 = vmatpush3.msra.mxu0 %v4171_v60  ;;  %3588 = vmatprep.subr.mxu1 %v3964_v17 }
 0xe9a   :  { %3577 = vmatprep.subr.mxu0 %v3964_v17 }
 0xf50   :  { %v1284_v7 = vpop.f32.mrf.mxu1 }
 0xf51   :  { %v1285_v61 = vadd.f32 %v4302_v52, %v1284_v7 }
 0xf52   :  { %v1209_v63 = vpop.f32.mrf.mxu0  ;;  %v3554_v0 = vpop.f32.mrf.mxu1 }
 0xf53   :  { %1296 = vrot.lane.b32.xlu0 %v1285_v61, %s3967_s20  ;;  %v1210_v3 = vadd.f32 %v4309_v62, %v1209_v63 }
 0xf54   :  { %v3543_v1 = vpop.f32.mrf.mxu0 }
 0xf55   :  { %v1288_v4 = vadd.f32 %v1285_v61, %v1210_v3 }
 0xf57   :  { %v3140_v6 = vmul.f32 -1.442695, %v1288_v4 }
 0xf59   :  { %3812 = vpow2.f32 %v3140_v6 }
 0xf66   :  { %v3813_v8 = vpop.eup %3812 }
 0xf67   :  { %v1292_v10 = vadd.f32 1.0, %v3813_v8 }
 0xf69   :  { %3814 = vrcp.f32 %v1292_v10 }
 0xf76   :  { %v3815_v12 = vpop.eup %3814 }
 0xf77   :  { %v1306_v22 = vsub.f32 1.0, %v3815_v12  ;;  %v1312_v24 = vmul.f32 %v3815_v12, %v1136_v55 }
 0xfc5   :  { %v1297_v14 = vpop.permute.xlu0 %1296 }
 0xfc6   :  { %v1299_v18 = vmul.f32 %v3815_v12, %v1297_v14 }
 0xfc8   :  { %1301 = vrot.lane.b32.xlu1 %v1299_v18, %s3967_s20 }
0x103a   :  { %v1302_v19 = vpop.permute.xlu1 %1301 }
0x103b   :  { %v1304_v20 = vadd.f32 %v1302_v19, %v1210_v3 }
0x103d   :  { %3816 = vtanh.f32 %v1304_v20 }
0x104a   :  { %v3817_v21 = vpop.eup %3816 }
0x104b   :  { %1308 = vrot.lane.b32.xlu0 %v3817_v21, %s3969_s13 }
0x10bd   :  { %v1309_v23 = vpop.permute.xlu0 %1308 }
0x10be   :  { %v1311_v25 = vmul.f32 %v1309_v23, %v1306_v22 }
0x10c0   :  { %v1313_v26 = vadd.f32 %v1312_v24, %v1311_v25 }
0x10c2   :  { %1315 = vrot.lane.b32.xlu1 %v1313_v26, %s3969_s13 }
0x1134   :  { %v1316_v27 = vpop.permute.xlu1 %1315 }
0x1135   :  { %1318 = vst.msk [vmem:[#allocation2 + $0x10] sm:$0xff] %vm332_vm10, %v1316_v27  ;;  %3564 = vmatmul.mubr.msk.f32.vlgmr.msra.gmra.mxu0 %vm332_vm10, %v1316_v27 }
0x1136   :  { %3578 = vmatpush3.msra.mxu0 %v4218_v34  ;;  %3585 = vmatprep.mubr.msk.f32.mxu0 %vm3965_vm1, %v3964_v17 }
0x1137   :  { %3579 = vmatprep.subr.mxu0 %v3964_v17 }
0x1138   :  { %3580 = vmatpush3.msra.mxu0 %v4223_v35 }
0x1139   :  { %3581 = vmatprep.subr.mxu0 %v3964_v17 }
0x113a   :  { %3582 = vmatpush3.msra.mxu0 %v4240_v38 }
0x113b   :  { %3583 = vmatprep.subr.mxu0 %v3964_v17 }
0x113c   :  { %3584 = vmatpush3.msra.mxu0 %v4254_v40 }
0x113d   :  { %3599 = vmatprep.subr.mxu0 %v3964_v17 }
0x11f5   :  { %v1387_v28 = vpop.f32.mrf.mxu0 }
0x11f6   :  { %v1388_v29 = vadd.f32 %v4204_v15, %v1387_v28 }
0x11f7   :  { %v3565_v30 = vpop.f32.mrf.mxu0 }
0x11f8   :  { %1399 = vrot.lane.b32.xlu0 %v1388_v29, %s3967_s20  ;;  %v1391_v31 = vadd.f32 %v1388_v29, %v4191_v5 }
0x11fa   :  { %v3142_v32 = vmul.f32 -1.442695, %v1391_v31 }
0x11fc   :  { %3818 = vpow2.f32 %v3142_v32 }
0x1209   :  { %v3819_v33 = vpop.eup %3818 }
0x120a   :  { %v1395_v41 = vadd.f32 1.0, %v3819_v33 }
0x120c   :  { %3820 = vrcp.f32 %v1395_v41 }
0x1219   :  { %v3821_v43 = vpop.eup %3820 }
0x121a   :  { %v1409_v50 = vsub.f32 1.0, %v3821_v43  ;;  %v1415_v53 = vmul.f32 %v3821_v43, %v1313_v26 }
0x126a   :  { %v1400_v44 = vpop.permute.xlu0 %1399 }
0x126b   :  { %v1402_v45 = vmul.f32 %v3821_v43, %v1400_v44 }
0x126d   :  { %1404 = vrot.lane.b32.xlu1 %v1402_v45, %s3967_s20 }
0x12df   :  { %v1405_v46 = vpop.permute.xlu1 %1404 }
0x12e0   :  { %v1407_v47 = vadd.f32 %v1405_v46, %v4191_v5 }
0x12e2   :  { %3822 = vtanh.f32 %v1407_v47 }
0x12ef   :  { %v3823_v49 = vpop.eup %3822 }
0x12f0   :  { %1411 = vrot.lane.b32.xlu0 %v3823_v49, %s3969_s13 }
0x1362   :  { %v1412_v51 = vpop.permute.xlu0 %1411 }
0x1363   :  { %v1414_v55 = vmul.f32 %v1412_v51, %v1409_v50 }
0x1365   :  { %v1416_v57 = vadd.f32 %v1415_v53, %v1414_v55 }
0x1367   :  { %1494 = vrot.lane.b32.xlu1 %v1416_v57, %s3969_s13  ;;  %v1417_v2 = vmul.f32 %v1416_v57, %v4272_v48 }
0x1369   :  { %1419 = vrot.lane.b32.xlu0 %v1417_v2, %s3969_s13 }
0x13d9   :  { %v1495_v59 = vpop.permute.xlu1 %1494 }
0x13da   :  { %3586 = vmatmul.mubr.msk.f32.vlgmr.msra.gmra.mxu0 %vm332_vm10, %v1495_v59 }
0x13db   :  { %v1420_v7 = vpop.permute.xlu0 %1419  ;;  %3600 = vmatpush3.msra.mxu0 %v4229_v36  ;;  %3607 = vmatprep.mubr.msk.f32.mxu0 %vm3965_vm1, %v3964_v17 }
0x13dc   :  { %3575 = vmatmul.mubr.msk.f32.vlgmr.msra.gmra.mxu1 %vm332_vm10, %v1420_v7  ;;  %3601 = vmatprep.subr.mxu0 %v3964_v17 }
0x13dd   :  { %3589 = vmatpush3.msra.mxu1 %v4148_v54  ;;  %3596 = vmatprep.mubr.msk.f32.mxu1 %vm3965_vm1, %v3964_v17 }
0x13de   :  { %3590 = vmatprep.subr.mxu1 %v3964_v17  ;;  %3602 = vmatpush3.msra.mxu0 %v4234_v37 }
0x13df   :  { %3591 = vmatpush3.msra.mxu1 %v4155_v56  ;;  %3603 = vmatprep.subr.mxu0 %v3964_v17 }
0x13e0   :  { %3592 = vmatprep.subr.mxu1 %v3964_v17  ;;  %3604 = vmatpush3.msra.mxu0 %v4248_v39 }
0x13e1   :  { %3593 = vmatpush3.msra.mxu1 %v4162_v58  ;;  %3605 = vmatprep.subr.mxu0 %v3964_v17 }
0x13e2   :  { %3594 = vmatprep.subr.mxu1 %v3964_v17  ;;  %3606 = vmatpush3.msra.mxu0 %v4268_v42 }
0x13e3   :  { %3595 = vmatpush3.msra.mxu1 %v4171_v60  ;;  %3621 = vmatprep.subr.mxu0 %v3964_v17 }
0x13e4   :  { %3610 = vmatprep.subr.mxu1 %v3964_v17 }
0x149a   :  { %v1564_v5 = vpop.f32.mrf.mxu0 }
0x149b   :  { %v1565_v61 = vadd.f32 %v4302_v52, %v1564_v5 }
0x149c   :  { %v1489_v63 = vpop.f32.mrf.mxu1  ;;  %v3587_v0 = vpop.f32.mrf.mxu0 }
0x149d   :  { %1576 = vrot.lane.b32.xlu1 %v1565_v61, %s3967_s20  ;;  %v1490_v3 = vadd.f32 %v4309_v62, %v1489_v63 }
0x149e   :  { %v3576_v1 = vpop.f32.mrf.mxu1 }
0x149f   :  { %v1568_v4 = vadd.f32 %v1565_v61, %v1490_v3 }
0x14a1   :  { %v3145_v6 = vmul.f32 -1.442695, %v1568_v4 }
0x14a3   :  { %3824 = vpow2.f32 %v3145_v6 }
0x14b0   :  { %v3825_v8 = vpop.eup %3824 }
0x14b1   :  { %v1572_v10 = vadd.f32 1.0, %v3825_v8 }
0x14b3   :  { %3826 = vrcp.f32 %v1572_v10 }
0x14c0   :  { %v3827_v12 = vpop.eup %3826 }
0x14c1   :  { %v1586_v22 = vsub.f32 1.0, %v3827_v12  ;;  %v1592_v24 = vmul.f32 %v3827_v12, %v1416_v57 }
0x150f   :  { %v1577_v14 = vpop.permute.xlu1 %1576 }
0x1510   :  { %v1579_v18 = vmul.f32 %v3827_v12, %v1577_v14 }
0x1512   :  { %1581 = vrot.lane.b32.xlu0 %v1579_v18, %s3967_s20 }
0x1584   :  { %v1582_v19 = vpop.permute.xlu0 %1581 }
0x1585   :  { %v1584_v20 = vadd.f32 %v1582_v19, %v1490_v3 }
0x1587   :  { %3828 = vtanh.f32 %v1584_v20 }
0x1594   :  { %v3829_v21 = vpop.eup %3828 }
0x1595   :  { %1588 = vrot.lane.b32.xlu1 %v3829_v21, %s3969_s13 }
0x1607   :  { %v1589_v23 = vpop.permute.xlu1 %1588 }
0x1608   :  { %v1591_v25 = vmul.f32 %v1589_v23, %v1586_v22 }
0x160a   :  { %v1593_v26 = vadd.f32 %v1592_v24, %v1591_v25 }
0x160c   :  { %1595 = vrot.lane.b32.xlu0 %v1593_v26, %s3969_s13 }
0x167e   :  { %v1596_v27 = vpop.permute.xlu0 %1595 }
0x167f   :  { %1598 = vst.msk [vmem:[#allocation2 + $0x18] sm:$0xff] %vm332_vm10, %v1596_v27  ;;  %3597 = vmatmul.mubr.msk.f32.vlgmr.msra.gmra.mxu1 %vm332_vm10, %v1596_v27 }
0x1680   :  { %3611 = vmatpush3.msra.mxu1 %v4218_v34  ;;  %3618 = vmatprep.mubr.msk.f32.mxu1 %vm3965_vm1, %v3964_v17 }
0x1681   :  { %3612 = vmatprep.subr.mxu1 %v3964_v17 }
0x1682   :  { %3613 = vmatpush3.msra.mxu1 %v4223_v35 }
0x1683   :  { %3614 = vmatprep.subr.mxu1 %v3964_v17 }
0x1684   :  { %3615 = vmatpush3.msra.mxu1 %v4240_v38 }
0x1685   :  { %3616 = vmatprep.subr.mxu1 %v3964_v17 }
0x1686   :  { %3617 = vmatpush3.msra.mxu1 %v4254_v40 }
0x1687   :  { %3632 = vmatprep.subr.mxu1 %v3964_v17 }
0x173f   :  { %v1667_v28 = vpop.f32.mrf.mxu1 }
0x1740   :  { %v1668_v29 = vadd.f32 %v4204_v15, %v1667_v28 }
0x1741   :  { %v3598_v30 = vpop.f32.mrf.mxu1 }
0x1742   :  { %1679 = vrot.lane.b32.xlu1 %v1668_v29, %s3967_s20  ;;  %v1671_v31 = vadd.f32 %v1668_v29, %v4197_v11 }
0x1744   :  { %v3147_v32 = vmul.f32 -1.442695, %v1671_v31 }
0x1746   :  { %3830 = vpow2.f32 %v3147_v32 }
0x1753   :  { %v3831_v33 = vpop.eup %3830 }
0x1754   :  { %v1675_v41 = vadd.f32 1.0, %v3831_v33 }
0x1756   :  { %3832 = vrcp.f32 %v1675_v41 }
0x1763   :  { %v3833_v43 = vpop.eup %3832 }
0x1764   :  { %v1689_v50 = vsub.f32 1.0, %v3833_v43  ;;  %v1695_v53 = vmul.f32 %v3833_v43, %v1593_v26 }
0x17b4   :  { %v1680_v44 = vpop.permute.xlu1 %1679 }
0x17b5   :  { %v1682_v45 = vmul.f32 %v3833_v43, %v1680_v44 }
0x17b7   :  { %1684 = vrot.lane.b32.xlu0 %v1682_v45, %s3967_s20 }
0x1829   :  { %v1685_v46 = vpop.permute.xlu0 %1684 }
0x182a   :  { %v1687_v47 = vadd.f32 %v1685_v46, %v4197_v11 }
0x182c   :  { %3834 = vtanh.f32 %v1687_v47  ;;  %v4560_v47 = vld [vmem:[%s4778_s4 + $0x28] sm:$0xff] }
0x1839   :  { %v3835_v49 = vpop.eup %3834 }
0x183a   :  { %1691 = vrot.lane.b32.xlu1 %v3835_v49, %s3969_s13 }
0x18ac   :  { %v1692_v51 = vpop.permute.xlu1 %1691 }
0x18ad   :  { %v1694_v55 = vmul.f32 %v1692_v51, %v1689_v50 }
0x18af   :  { %v1696_v57 = vadd.f32 %v1695_v53, %v1694_v55 }
0x18b1   :  { %1774 = vrot.lane.b32.xlu0 %v1696_v57, %s3969_s13  ;;  %v1697_v2 = vmul.f32 %v1696_v57, %v4272_v48 }
0x18b3   :  { %1699 = vrot.lane.b32.xlu1 %v1697_v2, %s3969_s13 }
0x1923   :  { %v1775_v59 = vpop.permute.xlu0 %1774 }
0x1924   :  { %3619 = vmatmul.mubr.msk.f32.vlgmr.msra.gmra.mxu1 %vm332_vm10, %v1775_v59 }
0x1925   :  { %v1700_v7 = vpop.permute.xlu1 %1699  ;;  %3633 = vmatpush3.msra.mxu1 %v4229_v36  ;;  %3640 = vmatprep.mubr.msk.f32.mxu1 %vm3965_vm1, %v3964_v17 }
0x1926   :  { %3608 = vmatmul.mubr.msk.f32.vlgmr.msra.gmra.mxu0 %vm332_vm10, %v1700_v7  ;;  %3634 = vmatprep.subr.mxu1 %v3964_v17 }
0x1927   :  { %3622 = vmatpush3.msra.mxu0 %v4148_v54  ;;  %3629 = vmatprep.mubr.msk.f32.mxu0 %vm3965_vm1, %v3964_v17 }
0x1928   :  { %3623 = vmatprep.subr.mxu0 %v3964_v17  ;;  %3635 = vmatpush3.msra.mxu1 %v4234_v37 }
0x1929   :  { %3624 = vmatpush3.msra.mxu0 %v4155_v56  ;;  %3636 = vmatprep.subr.mxu1 %v3964_v17 }
0x192a   :  { %3625 = vmatprep.subr.mxu0 %v3964_v17  ;;  %3637 = vmatpush3.msra.mxu1 %v4248_v39 }
0x192b   :  { %3626 = vmatpush3.msra.mxu0 %v4162_v58  ;;  %3638 = vmatprep.subr.mxu1 %v3964_v17 }
0x192c   :  { %3627 = vmatprep.subr.mxu0 %v3964_v17  ;;  %3639 = vmatpush3.msra.mxu1 %v4268_v42 }
0x192d   :  { %3628 = vmatpush3.msra.mxu0 %v4171_v60  ;;  %3654 = vmatprep.subr.mxu1 %v3964_v17 }
0x192e   :  { %3643 = vmatprep.subr.mxu0 %v3964_v17 }
0x19e4   :  { %v1844_v54 = vpop.f32.mrf.mxu1 }
0x19e5   :  { %v1845_v56 = vadd.f32 %v4302_v52, %v1844_v54 }
0x19e6   :  { %v1769_v11 = vpop.f32.mrf.mxu0  ;;  %v3620_v5 = vpop.f32.mrf.mxu1 }
0x19e7   :  { %1856 = vrot.lane.b32.xlu0 %v1845_v56, %s3967_s20  ;;  %v1770_v61 = vadd.f32 %v4309_v62, %v1769_v11 }
0x19e8   :  { %v3609_v58 = vpop.f32.mrf.mxu0 }
0x19e9   :  { %v1848_v63 = vadd.f32 %v1845_v56, %v1770_v61 }
0x19eb   :  { %v3150_v0 = vmul.f32 -1.442695, %v1848_v63 }
0x19ed   :  { %3836 = vpow2.f32 %v3150_v0 }
0x19fa   :  { %v3837_v1 = vpop.eup %3836 }
0x19fb   :  { %v1852_v3 = vadd.f32 1.0, %v3837_v1 }
0x19fd   :  { %3838 = vrcp.f32 %v1852_v3  ;;  %v4585_v3 = vld [vmem:[%s4779_s5 + $0x38] sm:$0xff] }
0x1a0a   :  { %v3839_v60 = vpop.eup %3838 }
0x1a0b   :  { %v1866_v14 = vsub.f32 1.0, %v3839_v60  ;;  %v1872_v19 = vmul.f32 %v3839_v60, %v1696_v57 }
0x1a59   :  { %v1857_v4 = vpop.permute.xlu0 %1856 }
0x1a5a   :  { %v1859_v6 = vmul.f32 %v3839_v60, %v1857_v4  ;;  %v4594_v60 = vld [vmem:[%s4779_s5 + $0x30] sm:$0xff]  ;;  %v4601_v4 = vld [vmem:[%s4779_s5 + $0x28] sm:$0xff] }
0x1a5c   :  { %1861 = vrot.lane.b32.xlu1 %v1859_v6, %s3967_s20  ;;  %v4608_v6 = vld [vmem:[%s4779_s5 + $0x20] sm:$0xff] }
0x1ace   :  { %v1862_v8 = vpop.permute.xlu1 %1861 }
0x1acf   :  { %v1864_v10 = vadd.f32 %v1862_v8, %v1770_v61 }
0x1ad1   :  { %3840 = vtanh.f32 %v1864_v10  ;;  %v4615_v10 = vld [vmem:[%s4778_s4 + $0x48] ss:$0 sm:$0xff] }
0x1ade   :  { %v3841_v12 = vpop.eup %3840 }
0x1adf   :  { %1868 = vrot.lane.b32.xlu0 %v3841_v12, %s3969_s13 }
0x1b51   :  { %v1869_v18 = vpop.permute.xlu0 %1868 }
0x1b52   :  { %v1871_v20 = vmul.f32 %v1869_v18, %v1866_v14 }
0x1b54   :  { %v1873_v21 = vadd.f32 %v1872_v19, %v1871_v20 }
0x1b56   :  { %1875 = vrot.lane.b32.xlu1 %v1873_v21, %s3969_s13 }
0x1bc8   :  { %v1876_v22 = vpop.permute.xlu1 %1875 }
0x1bc9   :  { %1878 = vst.msk [vmem:[#allocation2 + $0x20] sm:$0xff] %vm332_vm10, %v1876_v22  ;;  %3630 = vmatmul.mubr.msk.f32.vlgmr.msra.gmra.mxu0 %vm332_vm10, %v1876_v22 }
0x1bca   :  { %3644 = vmatpush3.msra.mxu0 %v4218_v34  ;;  %3651 = vmatprep.mubr.msk.f32.mxu0 %vm3965_vm1, %v3964_v17 }
0x1bcb   :  { %3645 = vmatprep.subr.mxu0 %v3964_v17 }
0x1bcc   :  { %3646 = vmatpush3.msra.mxu0 %v4223_v35 }
0x1bcd   :  { %3647 = vmatprep.subr.mxu0 %v3964_v17 }
0x1bce   :  { %3648 = vmatpush3.msra.mxu0 %v4240_v38 }
0x1bcf   :  { %3649 = vmatprep.subr.mxu0 %v3964_v17 }
0x1bd0   :  { %3650 = vmatpush3.msra.mxu0 %v4254_v40 }
0x1bd1   :  { %3665 = vmatprep.subr.mxu0 %v3964_v17 }
0x1c89   :  { %v1947_v23 = vpop.f32.mrf.mxu0 }
0x1c8a   :  { %v1948_v34 = vadd.f32 %v4204_v15, %v1947_v23 }
0x1c8b   :  { %v3631_v24 = vpop.f32.mrf.mxu0 }
0x1c8c   :  { %1959 = vrot.lane.b32.xlu0 %v1948_v34, %s3967_s20  ;;  %v1951_v25 = vadd.f32 %v1948_v34, %v4195_v9 }
0x1c8e   :  { %v3152_v26 = vmul.f32 -1.442695, %v1951_v25 }
0x1c90   :  { %3842 = vpow2.f32 %v3152_v26 }
0x1c9d   :  { %v3843_v35 = vpop.eup %3842 }
0x1c9e   :  { %v1955_v27 = vadd.f32 1.0, %v3843_v35 }
0x1ca0   :  { %3844 = vrcp.f32 %v1955_v27 }
0x1cad   :  { %v3845_v38 = vpop.eup %3844 }
0x1cae   :  { %v1969_v31 = vsub.f32 1.0, %v3845_v38  ;;  %v1975_v33 = vmul.f32 %v3845_v38, %v1873_v21 }
0x1cfe   :  { %v1960_v28 = vpop.permute.xlu0 %1959 }
0x1cff   :  { %v1962_v29 = vmul.f32 %v3845_v38, %v1960_v28 }
0x1d01   :  { %1964 = vrot.lane.b32.xlu1 %v1962_v29, %s3967_s20 }
0x1d73   :  { %v1965_v40 = vpop.permute.xlu1 %1964 }
0x1d74   :  { %v1967_v30 = vadd.f32 %v1965_v40, %v4195_v9  ;;  %v4541_v9 = vld [vmem:[%s4778_s4 + $0x38] sm:$0xff] }
0x1d76   :  { %3846 = vtanh.f32 %v1967_v30 }
0x1d83   :  { %v3847_v15 = vpop.eup %3846 }
0x1d84   :  { %1971 = vrot.lane.b32.xlu0 %v3847_v15, %s3969_s13 }
0x1df6   :  { %v1972_v32 = vpop.permute.xlu0 %1971 }
0x1df7   :  { %v1974_v41 = vmul.f32 %v1972_v32, %v1969_v31  ;;  %v3936_v31 = vld [vmem:[%s4779_s5 + $0x10] sm:$0xff]  ;;  %v3937_v32 = vld [vmem:[%s4779_s5 + $0x8] sm:$0xff] }
0x1df9   :  { %v1976_v43 = vadd.f32 %v1975_v33, %v1974_v41  ;;  %v3938_v33 = vld [vmem:[%s4779_s5] sm:$0xff] }
0x1dfb   :  { %2054 = vrot.lane.b32.xlu1 %v1976_v43, %s3969_s13  ;;  %v1977_v44 = vmul.f32 %v1976_v43, %v4272_v48 }
0x1dfd   :  { %1979 = vrot.lane.b32.xlu0 %v1977_v44, %s3969_s13 }
0x1e6d   :  { %v2055_v45 = vpop.permute.xlu1 %2054 }
0x1e6e   :  { %3652 = vmatmul.mubr.msk.f32.vlgmr.msra.gmra.mxu0 %vm332_vm10, %v2055_v45 }
0x1e6f   :  { %v1980_v46 = vpop.permute.xlu0 %1979  ;;  %3666 = vmatpush3.msra.mxu0 %v4229_v36  ;;  %3673 = vmatprep.mubr.msk.f32.mxu0 %vm3965_vm1, %v3964_v17  ;;  %v4551_v36 = vld [vmem:[%s4778_s4 + $0x30] sm:$0xff] }
0x1e70   :  { %3641 = vmatmul.mubr.msk.f32.vlgmr.msra.gmra.mxu1 %vm332_vm10, %v1980_v46  ;;  %3667 = vmatprep.subr.mxu0 %v3964_v17 }
0x1e71   :  { %3655 = vmatpush3.msra.mxu1 %v4541_v9  ;;  %3662 = vmatprep.mubr.msk.f32.mxu1 %vm3965_vm1, %v3964_v17 }
0x1e72   :  { %3656 = vmatprep.subr.mxu1 %v3964_v17  ;;  %3668 = vmatpush3.msra.mxu0 %v4234_v37  ;;  %v4569_v37 = vld [vmem:[%s4778_s4 + $0x20] sm:$0xff] }
0x1e73   :  { %3657 = vmatpush3.msra.mxu1 %v4551_v36  ;;  %3669 = vmatprep.subr.mxu0 %v3964_v17 }
0x1e74   :  { %3658 = vmatprep.subr.mxu1 %v3964_v17  ;;  %3670 = vmatpush3.msra.mxu0 %v4248_v39 }
0x1e75   :  { %3659 = vmatpush3.msra.mxu1 %v4560_v47  ;;  %3671 = vmatprep.subr.mxu0 %v3964_v17 }
0x1e76   :  { %3660 = vmatprep.subr.mxu1 %v3964_v17  ;;  %3672 = vmatpush3.msra.mxu0 %v4268_v42 }
0x1e77   :  { %3661 = vmatpush3.msra.mxu1 %v4569_v37  ;;  %3687 = vmatprep.subr.mxu0 %v3964_v17 }
0x1e78   :  { %3676 = vmatprep.subr.mxu1 %v3964_v17 }
0x1f2e   :  { %v2124_v39 = vpop.f32.mrf.mxu0 }
0x1f2f   :  { %v2125_v49 = vadd.f32 %v4302_v52, %v2124_v39 }
0x1f30   :  { %v2049_v50 = vpop.f32.mrf.mxu1  ;;  %v3653_v51 = vpop.f32.mrf.mxu0 }
0x1f31   :  { %2136 = vrot.lane.b32.xlu1 %v2125_v49, %s3967_s20  ;;  %v2050_v42 = vadd.f32 %v4309_v62, %v2049_v50 }
0x1f32   :  { %v3642_v53 = vpop.f32.mrf.mxu1 }
0x1f33   :  { %v2128_v55 = vadd.f32 %v2125_v49, %v2050_v42 }
0x1f35   :  { %v3155_v57 = vmul.f32 -1.442695, %v2128_v55 }
0x1f37   :  { %3848 = vpow2.f32 %v3155_v57 }
0x1f44   :  { %v3849_v2 = vpop.eup %3848 }
0x1f45   :  { %v2132_v59 = vadd.f32 1.0, %v3849_v2 }
0x1f47   :  { %3850 = vrcp.f32 %v2132_v59 }
0x1f54   :  { %v3851_v7 = vpop.eup %3850 }
0x1f55   :  { %v2146_v58 = vsub.f32 1.0, %v3851_v7  ;;  %v2152_v62 = vmul.f32 %v3851_v7, %v1976_v43  ;;  %v4658_v43 = vld [vmem:[%s4779_s5 + $0x48] ss:$0 sm:$0xff] }
0x1fa3   :  { %v2137_v54 = vpop.permute.xlu1 %2136 }
0x1fa4   :  { %v2139_v56 = vmul.f32 %v3851_v7, %v2137_v54 }
0x1fa6   :  { %2141 = vrot.lane.b32.xlu0 %v2139_v56, %s3967_s20 }
0x2018   :  { %v2142_v11 = vpop.permute.xlu0 %2141 }
0x2019   :  { %v2144_v52 = vadd.f32 %v2142_v11, %v2050_v42 }
0x201b   :  { %3852 = vtanh.f32 %v2144_v52 }
0x2028   :  { %v3853_v5 = vpop.eup %3852 }
0x2029   :  { %2148 = vrot.lane.b32.xlu1 %v3853_v5, %s3969_s13 }
0x209b   :  { %v2149_v61 = vpop.permute.xlu1 %2148 }
0x209c   :  { %v2151_v63 = vmul.f32 %v2149_v61, %v2146_v58 }
0x209e   :  { %v2153_v0 = vadd.f32 %v2152_v62, %v2151_v63 }
0x20a0   :  { %2155 = vrot.lane.b32.xlu0 %v2153_v0, %s3969_s13 }
0x2112   :  { %v2156_v1 = vpop.permute.xlu0 %2155 }
0x2113   :  { %2158 = vst.msk [vmem:[#allocation2 + $0x28] sm:$0xff] %vm332_vm10, %v2156_v1  ;;  %3663 = vmatmul.mubr.msk.f32.vlgmr.msra.gmra.mxu1 %vm332_vm10, %v2156_v1 }
0x2114   :  { %3677 = vmatpush3.msra.mxu1 %v4585_v3  ;;  %3684 = vmatprep.mubr.msk.f32.mxu1 %vm3965_vm1, %v3964_v17 }
0x2115   :  { %3678 = vmatprep.subr.mxu1 %v3964_v17 }
0x2116   :  { %3679 = vmatpush3.msra.mxu1 %v4594_v60 }
0x2117   :  { %3680 = vmatprep.subr.mxu1 %v3964_v17 }
0x2118   :  { %3681 = vmatpush3.msra.mxu1 %v4601_v4 }
0x2119   :  { %3682 = vmatprep.subr.mxu1 %v3964_v17 }
0x211a   :  { %3683 = vmatpush3.msra.mxu1 %v4608_v6 }
0x211b   :  { %3698 = vmatprep.subr.mxu1 %v3964_v17 }
0x21d3   :  { %v2227_v8 = vpop.f32.mrf.mxu1 }
0x21d4   :  { %v2228_v12 = vadd.f32 %v4615_v10, %v2227_v8 }
0x21d5   :  { %v3664_v14 = vpop.f32.mrf.mxu1 }
0x21d6   :  { %2239 = vrot.lane.b32.xlu1 %v2228_v12, %s3967_s20  ;;  %v2231_v18 = vadd.f32 %v2228_v12, %v4206_v16 }
0x21d8   :  { %v3157_v19 = vmul.f32 -1.442695, %v2231_v18 }
0x21da   :  { %3854 = vpow2.f32 %v3157_v19 }
0x21e7   :  { %v3855_v20 = vpop.eup %3854 }
0x21e8   :  { %v2235_v21 = vadd.f32 1.0, %v3855_v20 }
0x21ea   :  { %3856 = vrcp.f32 %v2235_v21 }
0x21f7   :  { %v3857_v22 = vpop.eup %3856 }
0x21f8   :  { %v2249_v35 = vsub.f32 1.0, %v3857_v22  ;;  %v2255_v38 = vmul.f32 %v3857_v22, %v2153_v0 }
0x2248   :  { %v2240_v23 = vpop.permute.xlu1 %2239 }
0x2249   :  { %v2242_v34 = vmul.f32 %v3857_v22, %v2240_v23  ;;  %v61_v23 = vld [vmem:[%s4780_s6 + $0x10] sm:$0xff] }
0x224b   :  { %2244 = vrot.lane.b32.xlu0 %v2242_v34, %s3967_s20  ;;  %v2719_v34 = vld [vmem:[#allocation2] sm:$0xff] }
0x22bd   :  { %v2245_v24 = vpop.permute.xlu0 %2244 }
0x22be   :  { %v2247_v25 = vadd.f32 %v2245_v24, %v4206_v16  ;;  %v3935_v16 = vld [vmem:[%s4779_s5 + $0x18] sm:$0xff]  ;;  %v59_v24 = vld [vmem:[%s4780_s6] sm:$0xff] }
0x22c0   :  { %3858 = vtanh.f32 %v2247_v25  ;;  %v2720_v25 = vld [vmem:[#allocation2 + $0x8] sm:$0xff] }
0x22cd   :  { %v3859_v26 = vpop.eup %3858 }
0x22ce   :  { %2251 = vrot.lane.b32.xlu1 %v3859_v26, %s3969_s13  ;;  %v2721_v26 = vld [vmem:[#allocation2 + $0x10] sm:$0xff] }
0x2340   :  { %v2252_v27 = vpop.permute.xlu1 %2251 }
0x2341   :  { %v2254_v28 = vmul.f32 %v2252_v27, %v2249_v35  ;;  %v2722_v35 = vld [vmem:[#allocation2 + $0x18] sm:$0xff]  ;;  %v2723_v27 = vld [vmem:[#allocation2 + $0x20] sm:$0xff] }
0x2343   :  { %v2256_v29 = vadd.f32 %v2255_v38, %v2254_v28  ;;  %v2724_v38 = vld [vmem:[#allocation2 + $0x28] sm:$0xff] }
0x2345   :  { %2334 = vrot.lane.b32.xlu0 %v2256_v29, %s3969_s13  ;;  %v2257_v40 = vmul.f32 %v2256_v29, %v4272_v48 }
0x2347   :  { %2259 = vrot.lane.b32.xlu1 %v2257_v40, %s3969_s13  ;;  %v66_v40 = vld [vmem:[%s4781_s7 + $0x10] sm:$0xff] }
0x23b7   :  { %v2335_v30 = vpop.permute.xlu0 %2334 }
0x23b8   :  { %3685 = vmatmul.mubr.msk.f32.vlgmr.msra.gmra.mxu1 %vm332_vm10, %v2335_v30  ;;  %v65_v30 = vld [vmem:[%s4781_s7 + $0x8] sm:$0xff] }
0x23b9   :  { %v2260_v15 = vpop.permute.xlu1 %2259  ;;  %3699 = vmatpush3.msra.mxu1 %v3935_v16  ;;  %3706 = vmatprep.mubr.msk.f32.mxu1 %vm3965_vm1, %v3964_v17 }
0x23ba   :  { %3674 = vmatmul.mubr.msk.f32.vlgmr.msra.gmra.mxu0 %vm332_vm10, %v2260_v15  ;;  %3700 = vmatprep.subr.mxu1 %v3964_v17  ;;  %v64_v15 = vld [vmem:[%s4781_s7] sm:$0xff] }
0x23bb   :  { %3688 = vmatpush3.msra.mxu0 %v4541_v9  ;;  %3695 = vmatprep.mubr.msk.f32.mxu0 %vm3965_vm1, %v3964_v17 }
0x23bc   :  { %3689 = vmatprep.subr.mxu0 %v3964_v17  ;;  %3701 = vmatpush3.msra.mxu1 %v3936_v31 }
0x23bd   :  { %3690 = vmatpush3.msra.mxu0 %v4551_v36  ;;  %3702 = vmatprep.subr.mxu1 %v3964_v17  ;;  %v4665_v36 = vld [vmem:[%s4779_s5 + $0x40] ss:$0 sm:$0xff] }
0x23be   :  { %3691 = vmatprep.subr.mxu0 %v3964_v17  ;;  %3703 = vmatpush3.msra.mxu1 %v3937_v32 }
0x23bf   :  { %3692 = vmatpush3.msra.mxu0 %v4560_v47  ;;  %3704 = vmatprep.subr.mxu1 %v3964_v17 }
0x23c0   :  { %3693 = vmatprep.subr.mxu0 %v3964_v17  ;;  %3705 = vmatpush3.msra.mxu1 %v3938_v33 }
0x23c1   :  { %3694 = vmatpush3.msra.mxu0 %v4569_v37 }
0x23c2   :  { %3709 = vmatprep.subr.mxu0 %v3964_v17 }
0x2478   :  { %v2404_v41 = vpop.f32.mrf.mxu1 }
0x2479   :  { %v2405_v44 = vadd.f32 %v4658_v43, %v2404_v41 }
0x247a   :  { %v2329_v45 = vpop.f32.mrf.mxu0  ;;  %v3686_v46 = vpop.f32.mrf.mxu1 }
0x247b   :  { %2416 = vrot.lane.b32.xlu0 %v2405_v44, %s3967_s20  ;;  %v2330_v47 = vadd.f32 %v4665_v36, %v2329_v45 }
0x247c   :  { %v3675_v9 = vpop.f32.mrf.mxu0 }
0x247d   :  { %v2408_v37 = vadd.f32 %v2405_v44, %v2330_v47  ;;  %v4733_v44 = vld [vmem:[%s4780_s6 + $0x20] ss:$0 sm:$0xff] }
0x247f   :  { %v3160_v39 = vmul.f32 -1.442695, %v2408_v37 }
0x2481   :  { %3860 = vpow2.f32 %v3160_v39 }
0x248e   :  { %v3861_v49 = vpop.eup %3860 }
0x248f   :  { %v2412_v50 = vadd.f32 1.0, %v3861_v49 }
0x2491   :  { %3862 = vrcp.f32 %v2412_v50 }
0x249e   :  { %v3863_v51 = vpop.eup %3862 }
0x249f   :  { %v2426_v59 = vsub.f32 1.0, %v3863_v51  ;;  %v2432_v54 = vmul.f32 %v3863_v51, %v2256_v29  ;;  %v67_v29 = vld [vmem:[%s4781_s7 + $0x18] sm:$0xff] }
0x24ed   :  { %v2417_v53 = vpop.permute.xlu0 %2416 }
0x24ee   :  { %v2419_v42 = vmul.f32 %v3863_v51, %v2417_v53 }
0x24f0   :  { %2421 = vrot.lane.b32.xlu1 %v2419_v42, %s3967_s20 }
0x2562   :  { %v2422_v55 = vpop.permute.xlu1 %2421 }
0x2563   :  { %v2424_v57 = vadd.f32 %v2422_v55, %v2330_v47 }
0x2565   :  { %3864 = vtanh.f32 %v2424_v57 }
0x2572   :  { %v3865_v2 = vpop.eup %3864 }
0x2573   :  { %2428 = vrot.lane.b32.xlu0 %v3865_v2, %s3969_s13 }
0x25e5   :  { %v2429_v7 = vpop.permute.xlu0 %2428 }
0x25e6   :  { %v2431_v56 = vmul.f32 %v2429_v7, %v2426_v59 }
0x25e8   :  { %v2433_v11 = vadd.f32 %v2432_v54, %v2431_v56 }
0x25ea   :  { %2435 = vrot.lane.b32.xlu1 %v2433_v11, %s3969_s13 }
0x265c   :  { %v2436_v52 = vpop.permute.xlu1 %2435 }
0x265d   :  { %2438 = vst.msk [vmem:[#allocation2 + $0x30] sm:$0xff] %vm332_vm10, %v2436_v52  ;;  %3696 = vmatmul.mubr.msk.f32.vlgmr.msra.gmra.mxu0 %vm332_vm10, %v2436_v52 }
0x265e   :  { %3710 = vmatpush3.msra.mxu0 %v4585_v3  ;;  %3717 = vmatprep.mubr.msk.f32.mxu0 %vm3965_vm1, %v3964_v17 }
0x265f   :  { %3711 = vmatprep.subr.mxu0 %v3964_v17 }
0x2660   :  { %3712 = vmatpush3.msra.mxu0 %v4594_v60 }
0x2661   :  { %3713 = vmatprep.subr.mxu0 %v3964_v17 }
0x2662   :  { %3714 = vmatpush3.msra.mxu0 %v4601_v4 }
0x2663   :  { %3715 = vmatprep.subr.mxu0 %v3964_v17 }
0x2664   :  { %3716 = vmatpush3.msra.mxu0 %v4608_v6  ;;  %v2725_v28 = vld [vmem:[#allocation2 + $0x30] sm:$0xff] }
0x2665   :  { %3740 = vmatprep.subr.mxu0 %v67_v29 }
0x271d   :  { %v2507_v5 = vpop.f32.mrf.mxu0 }
0x271e   :  { %v2508_v58 = vadd.f32 %v4615_v10, %v2507_v5  ;;  %v62_v10 = vld [vmem:[%s4780_s6 + $0x18] sm:$0xff] }
0x271f   :  { %v3697_v61 = vpop.f32.mrf.mxu0  ;;  %3720 = vmatprep.subr.mxu1 %v62_v10 }
0x2720   :  { %2519 = vrot.lane.b32.xlu0 %v2508_v58, %s3967_s20  ;;  %v2511_v62 = vadd.f32 %v2508_v58, %v4199_v13 }
0x2722   :  { %v3162_v63 = vmul.f32 -1.442695, %v2511_v62 }
0x2724   :  { %3866 = vpow2.f32 %v3162_v63 }
0x2731   :  { %v3867_v0 = vpop.eup %3866 }
0x2732   :  { %v2515_v1 = vadd.f32 1.0, %v3867_v0 }
0x2734   :  { %3868 = vrcp.f32 %v2515_v1 }
0x2741   :  { %v3869_v3 = vpop.eup %3868 }
0x2742   :  { %v2529_v12 = vsub.f32 1.0, %v3869_v3  ;;  %v2535_v18 = vmul.f32 %v3869_v3, %v2433_v11 }
0x2792   :  { %v2520_v60 = vpop.permute.xlu0 %2519 }
0x2793   :  { %v2522_v4 = vmul.f32 %v3869_v3, %v2520_v60 }
0x2795   :  { %2524 = vrot.lane.b32.xlu1 %v2522_v4, %s3967_s20 }
0x2807   :  { %v2525_v17 = vpop.permute.xlu1 %2524 }
0x2808   :  { %v2527_v6 = vadd.f32 %v2525_v17, %v4199_v13  ;;  %v4753_v17 = vld [vmem:[%s4781_s7 + $0x20] ss:$0 sm:$0xff]  ;;  %s3970_s7 = smov [#allocation3]  }
0x280a   :  { %3870 = vtanh.f32 %v2527_v6 }
0x2817   :  { %v3871_v8 = vpop.eup %3870 }
0x2818   :  { %2531 = vrot.lane.b32.xlu0 %v3871_v8, %s3969_s13 }
0x288a   :  { %v2532_v14 = vpop.permute.xlu0 %2531 }
0x288b   :  { %v2534_v19 = vmul.f32 %v2532_v14, %v2529_v12 }
0x288d   :  { %v4691_v20 = vadd.f32 %v2535_v18, %v2534_v19 }
0x288f   :  { %2614 = vrot.lane.b32.xlu1 %v4691_v20, %s3969_s13  ;;  %v2537_v13 = vmul.f32 %v4691_v20, %v4272_v48  ;;  %v60_v48 = vld [vmem:[%s4780_s6 + $0x8] sm:$0xff] }
0x2891   :  { %2539 = vrot.lane.b32.xlu0 %v2537_v13, %s3969_s13 }
0x2901   :  { %v2615_v21 = vpop.permute.xlu1 %2614 }
0x2902   :  { %3718 = vmatmul.mubr.msk.f32.vlgmr.msra.gmra.mxu0 %vm332_vm10, %v2615_v21 }
0x2903   :  { %v2540_v22 = vpop.permute.xlu0 %2539  ;;  %3741 = vmatpush3.msra.mxu0 %v67_v29 }
0x2904   :  { %3707 = vmatmul.mubr.msk.f32.vlgmr.msra.gmra.mxu1 %vm332_vm10, %v2540_v22  ;;  %3742 = vmatprep.subr.mxu0 %v66_v40 }
0x2905   :  { %3721 = vmatpush3.msra.mxu1 %v62_v10  ;;  %3728 = vmatprep.mubr.msk.f32.mxu1 %vm332_vm10, %v2719_v34 }
0x2906   :  { %3722 = vmatprep.subr.mxu1 %v61_v23  ;;  %3743 = vmatpush3.msra.mxu0 %v66_v40 }
0x2907   :  { %3723 = vmatpush3.msra.mxu1 %v61_v23  ;;  %3744 = vmatprep.subr.mxu0 %v65_v30 }
0x2908   :  { %3724 = vmatprep.subr.mxu1 %v60_v48  ;;  %3745 = vmatpush3.msra.mxu0 %v65_v30 }
0x2909   :  { %3725 = vmatpush3.msra.mxu1 %v60_v48  ;;  %3746 = vmatprep.subr.mxu0 %v64_v15 }
0x290a   :  { %3726 = vmatprep.subr.mxu1 %v59_v24  ;;  %3747 = vmatpush3.msra.mxu0 %v64_v15 }
0x290b   :  { %3727 = vmatpush3.msra.mxu1 %v59_v24 }
0x290c   :  { %3729 = vmatmul.mubr.msk.f32.vlgmr.msra.gmra.mxu1 %vm332_vm10, %v2720_v25  ;;  %3760 = vmatprep.subr.mxu1 %v67_v29 }
0x290d   :  { %3731 = vmatprep.mubr.msk.f32.mxu1 %vm332_vm10, %v2721_v26  ;;  %3764 = vmatpush3.msra.mxu1 %v67_v29 }
0x290e   :  { %3761 = vmatprep.subr.mxu1 %v66_v40 }
0x290f   :  { %3765 = vmatpush3.msra.mxu1 %v66_v40 }
0x2910   :  { %3732 = vmatmul.mubr.msk.f32.gmra.mxu1 %vm332_vm10, %v2722_v35  ;;  %3762 = vmatprep.subr.mxu1 %v65_v30 }
0x2911   :  { %3734 = vmatprep.mubr.msk.f32.mxu1 %vm332_vm10, %v2723_v27  ;;  %3766 = vmatpush3.msra.mxu1 %v65_v30 }
0x2912   :  { %3763 = vmatprep.subr.mxu1 %v64_v15 }
0x2913   :  { %3767 = vmatpush3.msra.mxu1 %v64_v15 }
0x2914   :  { %3735 = vmatmul.mubr.msk.f32.gmra.mxu1 %vm332_vm10, %v2724_v38 }
0x2915   :  { %3737 = vmatprep.mubr.msk.f32.mxu1 %vm332_vm10, %v2725_v28 }
0x29c2   :  { %v2684_v16 = vpop.f32.mrf.mxu0 }
0x29c3   :  { %v2685_v31 = vadd.f32 %v4658_v43, %v2684_v16 }
0x29c4   :  { %v2609_v32 = vpop.f32.mrf.mxu1  ;;  %v3719_v33 = vpop.f32.mrf.mxu0 }
0x29c5   :  { %2696 = vrot.lane.b32.xlu1 %v2685_v31, %s3967_s20  ;;  %v2610_v56 = vadd.f32 %v4665_v36, %v2609_v32 }
0x29c6   :  { %v3708_v41 = vpop.f32.mrf.mxu1 }
0x29c7   :  { %v2688_v11 = vadd.f32 %v2685_v31, %v2610_v56 }
0x29c9   :  { %v3165_v52 = vmul.f32 -1.442695, %v2688_v11 }
0x29cc   :  { %v3730_v45 = vpop.f32.mrf.mxu1 }
0x29cd   :  { %v2827_v46 = vadd.f32 %v3730_v45, %v4733_v44 }
0x29ce   :  { %v2821_v9 = vpop.f32.mrf.mxu1 }
0x29cf   :  { %v2822_v47 = vadd.f32 %v4733_v44, %v2821_v9 }
0x29d0   :  { %v3733_v37 = vpop.f32.mrf.mxu1 }
0x29d1   :  { %3872 = vtanh.f32 %v2822_v47  ;;  %v2837_v43 = vadd.f32 %v3733_v37, %v4733_v44 }
0x29d2   :  { %3874 = vtanh.f32 %v2827_v46  ;;  %v2831_v39 = vpop.f32.mrf.mxu1 }
0x29d3   :  { %v2832_v49 = vadd.f32 %v4733_v44, %v2831_v39 }
0x29d4   :  { %v3736_v50 = vpop.f32.mrf.mxu1 }
0x29d5   :  { %3876 = vtanh.f32 %v2832_v49  ;;  %v2847_v51 = vadd.f32 %v3736_v50, %v4733_v44 }
0x29d6   :  { %3878 = vtanh.f32 %v2837_v43  ;;  %v2841_v53 = vpop.f32.mrf.mxu1 }
0x29d7   :  { %v2842_v42 = vadd.f32 %v4733_v44, %v2841_v53 }
0x29d9   :  { %3880 = vtanh.f32 %v2842_v42 }
0x29da   :  { %3882 = vtanh.f32 %v2847_v51 }
0x29db   :  { %3884 = vpow2.f32 %v3165_v52 }
0x29de   :  { %v3873_v55 = vpop.eup %3872 }
0x29df   :  { %v3875_v57 = vpop.eup %3874  ;;  %3748 = vmatprep.mubr.msk.f32.mxu0 %vm332_vm10, %v3873_v55 }
0x29e0   :  { %3749 = vmatmul.mubr.msk.f32.vlgmr.msra.gmra.mxu0 %vm332_vm10, %v3875_v57 }
0x29e2   :  { %v3877_v2 = vpop.eup %3876 }
0x29e3   :  { %v3879_v59 = vpop.eup %3878  ;;  %3751 = vmatprep.mubr.msk.f32.mxu0 %vm332_vm10, %v3877_v2 }
0x29e4   :  { %3752 = vmatmul.mubr.msk.f32.gmra.mxu0 %vm332_vm10, %v3879_v59 }
0x29e6   :  { %v3881_v7 = vpop.eup %3880 }
0x29e7   :  { %v3883_v54 = vpop.eup %3882  ;;  %3754 = vmatprep.mubr.msk.f32.mxu0 %vm332_vm10, %v3881_v7 }
0x29e8   :  { %3755 = vmatmul.mubr.msk.f32.gmra.mxu0 %vm332_vm10, %v3883_v54  ;;  %v3885_v5 = vpop.eup %3884 }
0x29e9   :  { %v2692_v58 = vadd.f32 1.0, %v3885_v5 }
0x29eb   :  { %3886 = vrcp.f32 %v2692_v58 }
0x29f8   :  { %v3887_v61 = vpop.eup %3886 }
0x29f9   :  { %v2706_v18 = vsub.f32 1.0, %v3887_v61  ;;  %v2712_v13 = vmul.f32 %v3887_v61, %v4691_v20 }
0x2a37   :  { %v2697_v62 = vpop.permute.xlu1 %2696 }
0x2a38   :  { %v2699_v63 = vmul.f32 %v3887_v61, %v2697_v62 }
0x2a3a   :  { %2701 = vrot.lane.b32.xlu0 %v2699_v63, %s3967_s20  ;;  %s3086_s20 = sshll.u32 %s3970_s7, 4  ;;  %s3087_s20 = int_to_ptr.vmem [resolvable:$true] %s3086_s20 }
0x2a3b   :  { %p3946_p1 = scmp.lt.s32.totalorder %s3087_s20, %s3087_s20 }
0x2aa0   :  { %v3750_v60 = vpop.f32.mrf.mxu0 }
0x2aa1   :  { %v2968_v23 = vadd.f32 %v3750_v60, %v4753_v17 }
0x2aa2   :  { %v2962_v4 = vpop.f32.mrf.mxu0 }
0x2aa3   :  { %v2963_v6 = vadd.f32 %v4753_v17, %v2962_v4 }
0x2aa4   :  { %v3753_v36 = vpop.f32.mrf.mxu0 }
0x2aa5   :  { %v2978_v10 = vadd.f32 %v3753_v36, %v4753_v17 }
0x2aa6   :  { %v2972_v8 = vpop.f32.mrf.mxu0 }
0x2aa7   :  { %v2973_v34 = vadd.f32 %v4753_v17, %v2972_v8 }
0x2aa8   :  { %v3756_v12 = vpop.f32.mrf.mxu0 }
0x2aa9   :  { %v2988_v14 = vadd.f32 %v3756_v12, %v4753_v17 }
0x2aaa   :  { %v2982_v48 = vpop.f32.mrf.mxu0 }
0x2aab   :  { %v2983_v24 = vadd.f32 %v4753_v17, %v2982_v48 }
0x2aac   :  { %v2702_v0 = vpop.permute.xlu0 %2701 }
0x2aad   :  { %v2704_v1 = vadd.f32 %v2702_v0, %v2610_v56 }
0x2aaf   :  { %3888 = vtanh.f32 %v2704_v1 }
0x2abc   :  { %v3889_v3 = vpop.eup %3888 }
0x2abd   :  { %2708 = vrot.lane.b32.xlu1 %v3889_v3, %s3969_s13 }
0x2ae1   :  { %3001 = vmax.xlane.f32.xlu1 %v2963_v6 }
0x2ae5   :  { %3007 = vmax.xlane.f32.xlu1 %v2978_v10 }
0x2ae9   :  { %3011 = vmax.xlane.f32.xlu1 %v2988_v14 }
0x2b2f   :  { %v2709_v19 = vpop.permute.xlu1 %2708 }
0x2b30   :  { %v2711_v21 = vmul.f32 %v2709_v19, %v2706_v18 }
0x2b32   :  { %v2713_v22 = vadd.f32 %v2712_v13, %v2711_v21 }
0x2b34   :  { %2715 = vrot.lane.b32.xlu0 %v2713_v22, %s3969_s13  ;;  %s3941_s13 = scalar_lea.vmem %s3087_s20, 1024 }
0x2b35   :  { %p3942_p0 = scmp.ne.s32.totalorder %s3087_s20, %s3941_s13  ;;  %p3947_p2 = scmp.lt.s32.totalorder %s3941_s13, %s3941_s13 }
0x2b37   :  { %p3948_p3 = por %p3947_p2, %p3946_p1 }
0x2b39   :  { %p3949_p4 = pnand %p3948_p3, %p3942_p0 }
0x2b53   :  { %3003 = vmax.xlane.f32.xlu0 %v2968_v23 }
0x2b57   :  { %3005 = vmax.xlane.f32.xlu0 %v2973_v34 }
0x2b5b   :  { %3009 = vmax.xlane.f32.xlu0 %v2983_v24 }
0x2b6a   :  { %v3002_v40 = vpop.xlane.xlu1 %3001 }
0x2b6b   :  { %v3017_v32 = vsub.f32 %v2963_v6, %v3002_v40 }
0x2b6d   :  { %v3025_v46 = vmul.f32 1.442695, %v3017_v32 }
0x2b6e   :  { %v3008_v15 = vpop.xlane.xlu1 %3007 }
0x2b6f   :  { %v3020_v33 = vsub.f32 %v2978_v10, %v3008_v15 }
0x2b71   :  { %v3031_v47 = vmul.f32 1.442695, %v3020_v33 }
0x2b72   :  { %v3012_v45 = vpop.xlane.xlu1 %3011 }
0x2b73   :  { %v3022_v37 = vsub.f32 %v2988_v14, %v3012_v45 }
0x2b75   :  { %v3035_v49 = vmul.f32 1.442695, %v3022_v37 }
0x2ba6   :  { %v2716_v25 = vpop.permute.xlu0 %2715 }
0x2ba7   :  { %2718 = vst.msk [vmem:[#allocation2 + $0x38] sm:$0xff] %vm332_vm10, %v2716_v25 }
0x2bae   :  { %v2726_v26 = vld [vmem:[#allocation2 + $0x38] sm:$0xff] }
0x2baf   :  { %3738 = vmatmul.mubr.msk.f32.gmra.mxu1 %vm332_vm10, %v2726_v26 }
0x2bdc   :  { %v3004_v30 = vpop.xlane.xlu0 %3003 }
0x2bdd   :  { %v3018_v16 = vsub.f32 %v2968_v23, %v3004_v30 }
0x2bdf   :  { %v3027_v41 = vmul.f32 1.442695, %v3018_v16 }
0x2be0   :  { %v3006_v31 = vpop.xlane.xlu0 %3005 }
0x2be1   :  { %v3019_v9 = vsub.f32 %v2973_v34, %v3006_v31 }
0x2be3   :  { %v3029_v43 = vmul.f32 1.442695, %v3019_v9 }
0x2c6f   :  { %v3739_v20 = vpop.f32.mrf.mxu1 }
0x2c70   :  { %v2857_v35 = vadd.f32 %v3739_v20, %v4733_v44 }
0x2c71   :  { %v2851_v27 = vpop.f32.mrf.mxu1 }
0x2c72   :  { %v2852_v38 = vadd.f32 %v4733_v44, %v2851_v27  ;;  %v3010_v44 = vpop.xlane.xlu0 %3009 }
0x2c73   :  { %v3021_v39 = vsub.f32 %v2983_v24, %v3010_v44 }
0x2c74   :  { %3890 = vtanh.f32 %v2852_v38 }
0x2c75   :  { %3892 = vtanh.f32 %v2857_v35  ;;  %v3033_v50 = vmul.f32 1.442695, %v3021_v39 }
0x2c76   :  { %3894 = vpow2.f32 %v3027_v41 }
0x2c77   :  { %3896 = vpow2.f32 %v3025_v46 }
0x2c78   :  { %3898 = vpow2.f32 %v3031_v47 }
0x2c79   :  { %3900 = vpow2.f32 %v3029_v43 }
0x2c7a   :  { %3902 = vpow2.f32 %v3035_v49 }
0x2c7b   :  { %3904 = vpow2.f32 %v3033_v50 }
0x2c81   :  { %v3891_v28 = vpop.eup %3890 }
0x2c82   :  { %v3893_v29 = vpop.eup %3892  ;;  %3757 = vmatprep.mubr.msk.f32.mxu1 %vm332_vm10, %v3891_v28 }
0x2c83   :  { %3758 = vmatmul.mubr.msk.f32.vlgmr.msra.gmra.mxu1 %vm332_vm10, %v3893_v29  ;;  %v3895_v57 = vpop.eup %3894 }
0x2c84   :  { %v3897_v2 = vpop.eup %3896 }
0x2c85   :  { %v3899_v59 = vpop.eup %3898 }
0x2c86   :  { %v3901_v7 = vpop.eup %3900 }
0x2c87   :  { %v3903_v54 = vpop.eup %3902 }
0x2c88   :  { %v3905_v56 = vpop.eup %3904 }
0x2d43   :  { %v3759_v51 = vpop.f32.mrf.mxu1 }
0x2d44   :  { %v2998_v53 = vadd.f32 %v3759_v51, %v4753_v17 }
0x2d45   :  { %v2992_v42 = vpop.f32.mrf.mxu1 }
0x2d46   :  { %v2993_v55 = vadd.f32 %v4753_v17, %v2992_v42  ;;  %3015 = vmax.xlane.f32.xlu1 %v2998_v53 }
0x2d48   :  { %3013 = vmax.xlane.f32.xlu0 %v2993_v55 }
0x2d4a   :  { %3043 = vadd.xlane.f32.xlu1 %v3895_v57 }
0x2d4c   :  { %3041 = vadd.xlane.f32.xlu0 %v3897_v2 }
0x2d4e   :  { %3047 = vadd.xlane.f32.xlu1 %v3899_v59 }
0x2d50   :  { %3045 = vadd.xlane.f32.xlu0 %v3901_v7 }
0x2d52   :  { %3051 = vadd.xlane.f32.xlu1 %v3903_v54 }
0x2d54   :  { %3049 = vadd.xlane.f32.xlu0 %v3905_v56 }
0x2dcf   :  { %v3016_v11 = vpop.xlane.xlu1 %3015 }
0x2dd0   :  { %v3024_v52 = vsub.f32 %v2998_v53, %v3016_v11 }
0x2dd1   :  { %v3014_v5 = vpop.xlane.xlu0 %3013 }
0x2dd2   :  { %v3039_v58 = vmul.f32 1.442695, %v3024_v52  ;;  %v3023_v61 = vsub.f32 %v2993_v55, %v3014_v5 }
0x2dd3   :  { %v3044_v62 = vpop.xlane.xlu1 %3043 }
0x2dd4   :  { %3906 = vpow2.f32 %v3039_v58  ;;  %v3037_v63 = vmul.f32 1.442695, %v3023_v61 }
0x2dd5   :  { %3908 = vrcp.f32 %v3044_v62  ;;  %v3042_v0 = vpop.xlane.xlu0 %3041 }
0x2dd6   :  { %3910 = vpow2.f32 %v3037_v63 }
0x2dd7   :  { %3912 = vrcp.f32 %v3042_v0  ;;  %v3048_v1 = vpop.xlane.xlu1 %3047 }
0x2dd8   :  { %3914 = vrcp.f32 %v3048_v1 }
0x2dd9   :  { %v3046_v3 = vpop.xlane.xlu0 %3045 }
0x2dda   :  { %3916 = vrcp.f32 %v3046_v3 }
0x2ddb   :  { %v3052_v60 = vpop.xlane.xlu1 %3051 }
0x2ddc   :  { %3918 = vrcp.f32 %v3052_v60 }
0x2ddd   :  { %v3050_v4 = vpop.xlane.xlu0 %3049 }
0x2dde   :  { %3920 = vrcp.f32 %v3050_v4 }
0x2de1   :  { %v3907_v36 = vpop.eup %3906 }
0x2de2   :  { %v3909_v17 = vpop.eup %3908  ;;  %3055 = vadd.xlane.f32.xlu1 %v3907_v36 }
0x2de3   :  { %v3911_v6 = vpop.eup %3910  ;;  %v3060_v8 = vmul.f32 %v3909_v17, %v3895_v57 }
0x2de4   :  { %v3913_v10 = vpop.eup %3912  ;;  %3053 = vadd.xlane.f32.xlu0 %v3911_v6 }
0x2de5   :  { %v3915_v12 = vpop.eup %3914  ;;  %3074 = vst [vmem:[#allocation3 + $0x8] sm:$0xff] %v3060_v8  ;;  %v3058_v14 = vmul.f32 %v3913_v10, %v3897_v2 }
0x2de6   :  { %v3064_v18 = vmul.f32 %v3915_v12, %v3899_v59 }
0x2de7   :  { %v3917_v19 = vpop.eup %3916  ;;  %3073 = vst [vmem:[#allocation3] sm:$0xff] %v3058_v14 }
0x2de8   :  { %3076 = vst [vmem:[#allocation3 + $0x18] sm:$0xff] %v3064_v18  ;;  %v3062_v13 = vmul.f32 %v3917_v19, %v3901_v7 }
0x2de9   :  { %v3919_v21 = vpop.eup %3918 }
0x2dea   :  { %3075 = vst [vmem:[#allocation3 + $0x10] sm:$0xff] %v3062_v13  ;;  %v3068_v22 = vmul.f32 %v3919_v21, %v3903_v54 }
0x2deb   :  { %v3921_v23 = vpop.eup %3920 }
0x2dec   :  { %3078 = vst [vmem:[#allocation3 + $0x28] sm:$0xff] %v3068_v22  ;;  %v3066_v34 = vmul.f32 %v3921_v23, %v3905_v56 }
0x2dee   :  { %3077 = vst [vmem:[#allocation3 + $0x20] sm:$0xff] %v3066_v34 }
0x2e6b   :  { %v3056_v48 = vpop.xlane.xlu1 %3055 }
0x2e6c   :  { %3922 = vrcp.f32 %v3056_v48 }
0x2e6d   :  { %v3054_v24 = vpop.xlane.xlu0 %3053 }
0x2e6e   :  { %3924 = vrcp.f32 %v3054_v24 }
0x2e79   :  { %v3923_v25 = vpop.eup %3922 }
0x2e7a   :  { %v3072_v26 = vmul.f32 %v3923_v25, %v3907_v36 }
0x2e7b   :  { %v3925_v20 = vpop.eup %3924 }
0x2e7c   :  { %3080 = vst [vmem:[#allocation3 + $0x38] sm:$0xff] %v3072_v26  ;;  %v3070_v35 = vmul.f32 %v3925_v20, %v3911_v6 }
0x2e7e   :  { %3079 = vst [vmem:[#allocation3 + $0x30] sm:$0xff] %v3070_v35 }
0x2e7f   :  { %3952 = shalt.err (!%p3949_p4)
}
0x2e80   :  { %s3971_s17 = smov 128   ;;  %s3972_s18 = smov 8  }
0x2e81   :  { %3092 = dma.vmem_to_hbm [thread:$0]  %s3087_s20, 1024, %s4782_s8, [#allocation4], %s3971_s17, %s3971_s17, %s3972_s18  }
0x2e82   :  { %3961 = dma.done.wait [#allocation4], 1024  }
0x2e83   :  { %3962 = vsyncadd [#allocation4], 4294966272 }
0x2e84   :  { %3096 = vsyncpa [#allocation4], 1 }

</bundles_post_ra>
